<compile_context>
chip_gen: v7x
topology: tpu7x:2x2x1
jax: 0.10.0
libtpu: 0.0.40
codegen_flags: <defaults>
</compile_context>

<pallas_src>
import jax
import jax.numpy as jnp
from jax.experimental import pallas as pl
from jax.experimental.pallas import tpu as pltpu

# TODO(synk): wav2vec2_feature_extractor (pretrained Wav2Vec2) not translatable in-script.
# TODO(synk): torchvision resnet50(pretrained=True) backbone not translatable in-script.
# TODO(synk): torchvision Resize((224,224))+Normalize transform not translatable in-script.
# TODO(synk): F.normalize(audio_mfcc, p=2, dim=2) feeds the skipped backbone, so it is omitted.

B = 2            # batch
C = 2048         # ResNet50 output channels (fixed by post_*_layer in_features=2048)
H1 = 128         # hidden size of post_* layers
ATT = 3 * H1     # 384 concat width
NCLS = 4         # post_att_layer_3 out_features
OUT_W = 3 * H1   # lane-dense output slab width (F2 | F3 | F4-padded)
NSTREAM = 3      # spec / mfcc / wav


def ser_head_kernel(x_ref, wproj_ref, bproj_ref,
                    w1_ref, b1_ref, w2_ref, b2_ref, w3_ref, b3_ref,
                    out_ref):
    """Single-shot head (grid=(1,); everything resident in VMEM).

    x_ref     : [3B, 2048] bf16  pooled activations, rows = [spec | mfcc | wav]
    wproj_ref : [2048, 384] bf16 concat of post_{spec,mfcc,wav}_layer weights
    bproj_ref : [1, 384]  f32    concat of the three projection biases
    w1/b1     : [384, 128] / [1, 128] f32   post_att_layer_1
    w2/b2     : [128, 128] / [1, 128] f32   post_att_layer_2
    w3/b3     : [128, 128] / [1, 128] f32   post_att_layer_3 zero-padded to 128 lanes
    out_ref   : [B, 384]  f32    (F2 | F3 | F4 padded to 128 lanes)
    """
    relu = lambda v: jnp.maximum(v, 0.0)

    # One consolidated 2048-contraction: [3B, 2048] @ [2048, 384] (f32 MXU accum).
    # Only the diagonal (stream i rows x stream i columns) blocks are used below;
    # the off-diagonal compute is negligible (~3 MFLOPs total) and keeps the MXU
    # pass full-width with a single DMA'd weight operand.
    proj = jnp.dot(x_ref[...], wproj_ref[...], preferred_element_type=jnp.float32)
    proj = relu(proj + bproj_ref[...])                       # [3B, 384]

    spec_p = proj[0:B, 0:H1]                                 # post_spec_layer + ReLU
    mfcc_p = proj[B:2 * B, H1:2 * H1]                        # post_mfcc_layer + ReLU
    wav_p = proj[2 * B:3 * B, 2 * H1:3 * H1]                 # post_wav_layer + ReLU

    # concat([spec_p, mfcc_p, wav_p], -1) @ W1  ==  sum of three 128-wide matmuls
    # against sublane-aligned static slices of the [384,128] weight.
    a1 = relu(jnp.dot(spec_p, w1_ref[0:H1, :], preferred_element_type=jnp.float32)
              + jnp.dot(mfcc_p, w1_ref[H1:2 * H1, :], preferred_element_type=jnp.float32)
              + jnp.dot(wav_p, w1_ref[2 * H1:3 * H1, :], preferred_element_type=jnp.float32)
              + b1_ref[...])                                                      # F2
    a2 = relu(jnp.dot(a1, w2_ref[...], preferred_element_type=jnp.float32)
              + b2_ref[...])                                                      # F3
    # w3/b3 are zero-padded to 128 output lanes at init -> a3 is [B, 128], with the
    # real 4 logits in lanes 0:4 and exact zeros elsewhere.
    a3 = jnp.dot(a2, w3_ref[...], preferred_element_type=jnp.float32) + b3_ref[...]

    # Lane-dense output slab; all three stores are 128-lane aligned.
    out_ref[:, 0:H1] = a1
    out_ref[:, H1:2 * H1] = a2
    out_ref[:, 2 * H1:3 * H1] = a3


def prepare_params(params):
    """One-time (load-time) packing: keep it OUT of the per-call path.

    - concat + bf16-cast the three 2048x128 projection weights -> [2048, 384] bf16
    - concat the three projection biases -> [1, 384] f32
    - zero-pad post_att_layer_3 to a lane-dense 128-wide output slot
    """
    wproj = jnp.concatenate(
        [params["w_spec"], params["w_mfcc"], params["w_wav"]], axis=1
    ).astype(jnp.bfloat16)                                            # [2048, 384]
    bproj = jnp.concatenate(
        [params["b_spec"], params["b_mfcc"], params["b_wav"]], axis=1)  # [1, 384]
    w3p = jnp.zeros((H1, H1), jnp.float32).at[:, :NCLS].set(params["w3"])
    b3p = jnp.zeros((1, H1), jnp.float32).at[:, :NCLS].set(params["b3"])
    return {
        "wproj": wproj, "bproj": bproj,
        "w1": params["w1"], "b1": params["b1"],
        "w2": params["w2"], "b2": params["b2"],
        "w3p": w3p, "b3p": b3p,
    }


def ser_model_head(spec_feat_nchw, mfcc_feat_nchw, wav_feat_nchw, packed):
    """Inputs: three ResNet50 feature maps, NCHW [B, 2048, 7, 7] (f32)."""
    # AdaptiveAvgPool2d((1,1)) + view(B, -1): pooled in f32 by XLA (fused with the
    # producer), stacked over the three streams, and cast to bf16 (tiny: 24 KB).
    pool = lambda x: jnp.mean(x.astype(jnp.float32), axis=(2, 3))     # [B, 2048]
    x_all = jnp.concatenate(
        [pool(spec_feat_nchw), pool(mfcc_feat_nchw), pool(wav_feat_nchw)],
        axis=0).astype(jnp.bfloat16)                                  # [3B, 2048]

    full = lambda shape: pl.BlockSpec(shape, lambda i: (0, 0))
    in_specs = [
        full((NSTREAM * B, C)),          # stacked pooled activations
        full((C, ATT)), full((1, ATT)),  # consolidated projection weight / bias
        full((ATT, H1)), full((1, H1)),  # w1, b1
        full((H1, H1)), full((1, H1)),   # w2, b2
        full((H1, H1)), full((1, H1)),   # w3 (padded), b3 (padded)
    ]
    out_specs = pl.BlockSpec((B, OUT_W), lambda i: (0, 0))
    out_shape = jax.ShapeDtypeStruct((B, OUT_W), jnp.float32)

    flops = 2 * (NSTREAM * B * C * ATT + B * ATT * H1 + B * H1 * H1 + B * H1 * H1)
    bytes_accessed = (
        NSTREAM * B * C * 2 +            # bf16 activations
        C * ATT * 2 +                    # bf16 projection weights
        4 * (ATT + ATT * H1 + H1 + H1 * H1 + H1 + H1 * H1 + H1) +  # f32 small params
        B * OUT_W * 4)                   # f32 output slab

    out = pl.pallas_call(
        ser_head_kernel,
        out_shape=out_shape,
        grid_spec=pltpu.PrefetchScalarGridSpec(
            num_scalar_prefetch=0,
            grid=(1,),
            in_specs=in_specs,
            out_specs=out_specs,
        ),
        compiler_params=pltpu.CompilerParams(
            dimension_semantics=("arbitrary",),
        ),
        cost_estimate=pl.CostEstimate(
            flops=int(flops), transcendentals=0, bytes_accessed=int(bytes_accessed)),
    )(x_all, packed["wproj"], packed["bproj"],
      packed["w1"], packed["b1"], packed["w2"], packed["b2"],
      packed["w3p"], packed["b3p"])

    f2 = out[:, 0:H1]
    f3 = out[:, H1:2 * H1]
    f4 = out[:, 2 * H1:2 * H1 + NCLS]
    return {"F2": f2, "F3": f3, "F4": f4, "M": f4}


def init_params(key):
    """Deterministic PyTorch-Linear-style init; weights stored [in, out]."""
    def linear(k, fan_in, fan_out):
        kw, kb = jax.random.split(k)
        bound = 1.0 / jnp.sqrt(fan_in)
        w = jax.random.uniform(kw, (fan_in, fan_out), jnp.float32, -bound, bound)
        b = jax.random.uniform(kb, (1, fan_out), jnp.float32, -bound, bound)
        return w, b

    ks = jax.random.split(key, 6)
    p = {}
    p["w_spec"], p["b_spec"] = linear(ks[0], C, H1)
    p["w_mfcc"], p["b_mfcc"] = linear(ks[1], C, H1)
    p["w_wav"], p["b_wav"] = linear(ks[2], C, H1)
    p["w1"], p["b1"] = linear(ks[3], ATT, H1)
    p["w2"], p["b2"] = linear(ks[4], H1, H1)
    p["w3"], p["b3"] = linear(ks[5], H1, NCLS)
    return p


def _reference(spec_nchw, mfcc_nchw, wav_nchw, p):
    """Plain-JAX reference using the same bf16 quantization of the 2048->128 stage."""
    relu = lambda x: jnp.maximum(x, 0.0)
    pool = lambda x: jnp.mean(x.astype(jnp.float32), axis=(2, 3))

    def proj(x, w, b):
        xb = pool(x).astype(jnp.bfloat16)
        wb = w.astype(jnp.bfloat16)
        return relu(jnp.dot(xb, wb, preferred_element_type=jnp.float32) + b)

    s = proj(spec_nchw, p["w_spec"], p["b_spec"])
    m = proj(mfcc_nchw, p["w_mfcc"], p["b_mfcc"])
    w = proj(wav_nchw, p["w_wav"], p["b_wav"])
    att = jnp.concatenate([s, m, w], axis=-1)
    a1 = relu(att @ p["w1"] + p["b1"])
    a2 = relu(a1 @ p["w2"] + p["b2"])
    a3 = a2 @ p["w3"] + p["b3"]
    return a1, a2, a3


if __name__ == "__main__":
    key = jax.random.PRNGKey(0)
    kp, k1, k2, k3 = jax.random.split(key, 4)

    params = init_params(kp)
    packed = prepare_params(params)   # one-time packing, outside the call path

    # Stand-ins for the three ResNet50 backbone outputs (NCHW [B, 2048, 7, 7]).
    spec_feat = jax.random.normal(k1, (B, C, 7, 7), jnp.float32)
    mfcc_feat = jax.random.normal(k2, (B, C, 7, 7), jnp.float32)
    wav_feat = jax.random.normal(k3, (B, C, 7, 7), jnp.float32)

    head = jax.jit(ser_model_head)
    out = head(spec_feat, mfcc_feat, wav_feat, packed)
    jax.block_until_ready(out)

    # Correctness check against a plain-JAX reference of the same head
    # (same bf16 quantization of the 2048->128 projections, f32 accumulation).
    r1, r2, r3 = _reference(spec_feat, mfcc_feat, wav_feat, params)
    assert jnp.allclose(out["F2"], r1, atol=2e-3, rtol=2e-3)
    assert jnp.allclose(out["F3"], r2, atol=2e-3, rtol=2e-3)
    assert jnp.allclose(out["F4"], r3, atol=2e-3, rtol=2e-3)

    print("KERNEL_OK")
</pallas_src>

<mosaic_0001>
module attributes {stable_mosaic.version = 11 : i64} {
  func.func @ser_head_kernel(%arg0: i32, %arg1: memref<6x2048xbf16, #tpu.memory_space<vmem>>, %arg2: memref<2048x384xbf16, #tpu.memory_space<vmem>>, %arg3: memref<1x384xf32, #tpu.memory_space<vmem>>, %arg4: memref<384x128xf32, #tpu.memory_space<vmem>>, %arg5: memref<1x128xf32, #tpu.memory_space<vmem>>, %arg6: memref<128x128xf32, #tpu.memory_space<vmem>>, %arg7: memref<1x128xf32, #tpu.memory_space<vmem>>, %arg8: memref<128x128xf32, #tpu.memory_space<vmem>>, %arg9: memref<1x128xf32, #tpu.memory_space<vmem>>, %arg10: memref<2x384xf32, #tpu.memory_space<vmem>>) attributes {dimension_semantics = [#tpu.dimension_semantics<arbitrary>], iteration_bounds = array<i64: 1>, scalar_prefetch = 0 : i64, scratch_operands = 0 : i64, tpu.core_type = #tpu.core_type<tc>, window_params = [{pipeline_mode = #tpu.pipeline_mode<synchronous>, transform_indices = @transform_0, window_bounds = array<i64: 6, 2048>}, {pipeline_mode = #tpu.pipeline_mode<synchronous>, transform_indices = @transform_1, window_bounds = array<i64: 2048, 384>}, {pipeline_mode = #tpu.pipeline_mode<synchronous>, transform_indices = @transform_2, window_bounds = array<i64: 1, 384>}, {pipeline_mode = #tpu.pipeline_mode<synchronous>, transform_indices = @transform_3, window_bounds = array<i64: 384, 128>}, {pipeline_mode = #tpu.pipeline_mode<synchronous>, transform_indices = @transform_4, window_bounds = array<i64: 1, 128>}, {pipeline_mode = #tpu.pipeline_mode<synchronous>, transform_indices = @transform_5, window_bounds = array<i64: 128, 128>}, {pipeline_mode = #tpu.pipeline_mode<synchronous>, transform_indices = @transform_6, window_bounds = array<i64: 1, 128>}, {pipeline_mode = #tpu.pipeline_mode<synchronous>, transform_indices = @transform_7, window_bounds = array<i64: 128, 128>}, {pipeline_mode = #tpu.pipeline_mode<synchronous>, transform_indices = @transform_8, window_bounds = array<i64: 1, 128>}, {pipeline_mode = #tpu.pipeline_mode<synchronous>, transform_indices = @transform_9, window_bounds = array<i64: 2, 384>}]} {
    %c0 = arith.constant 0 : index
    %c0_0 = arith.constant 0 : index
    %0 = vector.load %arg1[%c0, %c0_0] : memref<6x2048xbf16, #tpu.memory_space<vmem>>, vector<6x2048xbf16>
    %c0_1 = arith.constant 0 : index
    %c0_2 = arith.constant 0 : index
    %1 = vector.load %arg2[%c0_1, %c0_2] : memref<2048x384xbf16, #tpu.memory_space<vmem>>, vector<2048x384xbf16>
    %cst = arith.constant dense<0.000000e+00> : vector<6x384xf32>
    %2 = tpu.matmul %0, %1, %cst {dimension_numbers = #tpu.dot_dimension_numbers<[1], [0], [0], [1], [0, 0, 1, 1], [], []>} : vector<6x2048xbf16>, vector<2048x384xbf16>, vector<6x384xf32> -> vector<6x384xf32>
    %c0_3 = arith.constant 0 : index
    %c0_4 = arith.constant 0 : index
    %3 = vector.load %arg3[%c0_3, %c0_4] : memref<1x384xf32, #tpu.memory_space<vmem>>, vector<1x384xf32>
    %4 = vector.broadcast %3 : vector<1x384xf32> to vector<6x384xf32>
    %5 = arith.addf %2, %4 : vector<6x384xf32>
    %cst_5 = arith.constant 0.000000e+00 : f32
    %6 = vector.broadcast %cst_5 : f32 to vector<6x384xf32>
    %7 = arith.maximumf %5, %6 : vector<6x384xf32>
    %8 = vector.extract_strided_slice %7 {offsets = [0, 0], sizes = [2, 128], strides = [1, 1]} : vector<6x384xf32> to vector<2x128xf32>
    %9 = vector.extract_strided_slice %7 {offsets = [2, 128], sizes = [2, 128], strides = [1, 1]} : vector<6x384xf32> to vector<2x128xf32>
    %10 = vector.extract_strided_slice %7 {offsets = [4, 256], sizes = [2, 128], strides = [1, 1]} : vector<6x384xf32> to vector<2x128xf32>
    %c0_6 = arith.constant 0 : index
    %c0_7 = arith.constant 0 : index
    %11 = vector.load %arg4[%c0_6, %c0_7] : memref<384x128xf32, #tpu.memory_space<vmem>>, vector<128x128xf32>
    %cst_8 = arith.constant dense<0.000000e+00> : vector<2x128xf32>
    %12 = tpu.matmul %8, %11, %cst_8 {dimension_numbers = #tpu.dot_dimension_numbers<[1], [0], [0], [1], [0, 0, 1, 1], [], []>} : vector<2x128xf32>, vector<128x128xf32>, vector<2x128xf32> -> vector<2x128xf32>
    %c128 = arith.constant 128 : index
    %c0_9 = arith.constant 0 : index
    %13 = vector.load %arg4[%c128, %c0_9] : memref<384x128xf32, #tpu.memory_space<vmem>>, vector<128x128xf32>
    %cst_10 = arith.constant dense<0.000000e+00> : vector<2x128xf32>
    %14 = tpu.matmul %9, %13, %cst_10 {dimension_numbers = #tpu.dot_dimension_numbers<[1], [0], [0], [1], [0, 0, 1, 1], [], []>} : vector<2x128xf32>, vector<128x128xf32>, vector<2x128xf32> -> vector<2x128xf32>
    %15 = arith.addf %12, %14 : vector<2x128xf32>
    %c256 = arith.constant 256 : index
    %c0_11 = arith.constant 0 : index
    %16 = vector.load %arg4[%c256, %c0_11] : memref<384x128xf32, #tpu.memory_space<vmem>>, vector<128x128xf32>
    %cst_12 = arith.constant dense<0.000000e+00> : vector<2x128xf32>
    %17 = tpu.matmul %10, %16, %cst_12 {dimension_numbers = #tpu.dot_dimension_numbers<[1], [0], [0], [1], [0, 0, 1, 1], [], []>} : vector<2x128xf32>, vector<128x128xf32>, vector<2x128xf32> -> vector<2x128xf32>
    %18 = arith.addf %15, %17 : vector<2x128xf32>
    %c0_13 = arith.constant 0 : index
    %c0_14 = arith.constant 0 : index
    %19 = vector.load %arg5[%c0_13, %c0_14] : memref<1x128xf32, #tpu.memory_space<vmem>>, vector<1x128xf32>
    %20 = vector.broadcast %19 : vector<1x128xf32> to vector<2x128xf32>
    %21 = arith.addf %18, %20 : vector<2x128xf32>
    %cst_15 = arith.constant 0.000000e+00 : f32
    %22 = vector.broadcast %cst_15 : f32 to vector<2x128xf32>
    %23 = arith.maximumf %21, %22 : vector<2x128xf32>
    %c0_16 = arith.constant 0 : index
    %c0_17 = arith.constant 0 : index
    %24 = vector.load %arg6[%c0_16, %c0_17] : memref<128x128xf32, #tpu.memory_space<vmem>>, vector<128x128xf32>
    %cst_18 = arith.constant dense<0.000000e+00> : vector<2x128xf32>
    %25 = tpu.matmul %23, %24, %cst_18 {dimension_numbers = #tpu.dot_dimension_numbers<[1], [0], [0], [1], [0, 0, 1, 1], [], []>} : vector<2x128xf32>, vector<128x128xf32>, vector<2x128xf32> -> vector<2x128xf32>
    %c0_19 = arith.constant 0 : index
    %c0_20 = arith.constant 0 : index
    %26 = vector.load %arg7[%c0_19, %c0_20] : memref<1x128xf32, #tpu.memory_space<vmem>>, vector<1x128xf32>
    %27 = vector.broadcast %26 : vector<1x128xf32> to vector<2x128xf32>
    %28 = arith.addf %25, %27 : vector<2x128xf32>
    %cst_21 = arith.constant 0.000000e+00 : f32
    %29 = vector.broadcast %cst_21 : f32 to vector<2x128xf32>
    %30 = arith.maximumf %28, %29 : vector<2x128xf32>
    %c0_22 = arith.constant 0 : index
    %c0_23 = arith.constant 0 : index
    %31 = vector.load %arg8[%c0_22, %c0_23] : memref<128x128xf32, #tpu.memory_space<vmem>>, vector<128x128xf32>
    %cst_24 = arith.constant dense<0.000000e+00> : vector<2x128xf32>
    %32 = tpu.matmul %30, %31, %cst_24 {dimension_numbers = #tpu.dot_dimension_numbers<[1], [0], [0], [1], [0, 0, 1, 1], [], []>} : vector<2x128xf32>, vector<128x128xf32>, vector<2x128xf32> -> vector<2x128xf32>
    %c0_25 = arith.constant 0 : index
    %c0_26 = arith.constant 0 : index
    %33 = vector.load %arg9[%c0_25, %c0_26] : memref<1x128xf32, #tpu.memory_space<vmem>>, vector<1x128xf32>
    %34 = vector.broadcast %33 : vector<1x128xf32> to vector<2x128xf32>
    %35 = arith.addf %32, %34 : vector<2x128xf32>
    %c0_27 = arith.constant 0 : index
    %c0_28 = arith.constant 0 : index
    %36 = vector.load %arg10[%c0_27, %c0_28] : memref<2x384xf32, #tpu.memory_space<vmem>>, vector<2x128xf32>
    tpu.vector_store %arg10[%c0_27, %c0_28], %23 {strides = array<i32>} : memref<2x384xf32, #tpu.memory_space<vmem>>, vector<2x128xf32>,
    %c0_29 = arith.constant 0 : index
    %c128_30 = arith.constant 128 : index
    %37 = vector.load %arg10[%c0_29, %c128_30] : memref<2x384xf32, #tpu.memory_space<vmem>>, vector<2x128xf32>
    tpu.vector_store %arg10[%c0_29, %c128_30], %30 {strides = array<i32>} : memref<2x384xf32, #tpu.memory_space<vmem>>, vector<2x128xf32>,
    %c0_31 = arith.constant 0 : index
    %c256_32 = arith.constant 256 : index
    %38 = vector.load %arg10[%c0_31, %c256_32] : memref<2x384xf32, #tpu.memory_space<vmem>>, vector<2x128xf32>
    tpu.vector_store %arg10[%c0_31, %c256_32], %35 {strides = array<i32>} : memref<2x384xf32, #tpu.memory_space<vmem>>, vector<2x128xf32>,
    return
  }
  func.func @transform_0(%arg0: i32) -> (i32, i32) {
    %c0_i32 = arith.constant 0 : i32
    %c0_i32_0 = arith.constant 0 : i32
    %c0_i32_1 = arith.constant 0 : i32
    return %c0_i32, %c0_i32_0 : i32, i32
  }
  func.func @transform_1(%arg0: i32) -> (i32, i32) {
    %c0_i32 = arith.constant 0 : i32
    %c0_i32_0 = arith.constant 0 : i32
    %c0_i32_1 = arith.constant 0 : i32
    return %c0_i32, %c0_i32_0 : i32, i32
  }
  func.func @transform_2(%arg0: i32) -> (i32, i32) {
    %c0_i32 = arith.constant 0 : i32
    %c0_i32_0 = arith.constant 0 : i32
    %c0_i32_1 = arith.constant 0 : i32
    return %c0_i32, %c0_i32_0 : i32, i32
  }
  func.func @transform_3(%arg0: i32) -> (i32, i32) {
    %c0_i32 = arith.constant 0 : i32
    %c0_i32_0 = arith.constant 0 : i32
    %c0_i32_1 = arith.constant 0 : i32
    return %c0_i32, %c0_i32_0 : i32, i32
  }
  func.func @transform_4(%arg0: i32) -> (i32, i32) {
    %c0_i32 = arith.constant 0 : i32
    %c0_i32_0 = arith.constant 0 : i32
    %c0_i32_1 = arith.constant 0 : i32
    return %c0_i32, %c0_i32_0 : i32, i32
  }
  func.func @transform_5(%arg0: i32) -> (i32, i32) {
    %c0_i32 = arith.constant 0 : i32
    %c0_i32_0 = arith.constant 0 : i32
    %c0_i32_1 = arith.constant 0 : i32
    return %c0_i32, %c0_i32_0 : i32, i32
  }
  func.func @transform_6(%arg0: i32) -> (i32, i32) {
    %c0_i32 = arith.constant 0 : i32
    %c0_i32_0 = arith.constant 0 : i32
    %c0_i32_1 = arith.constant 0 : i32
    return %c0_i32, %c0_i32_0 : i32, i32
  }
  func.func @transform_7(%arg0: i32) -> (i32, i32) {
    %c0_i32 = arith.constant 0 : i32
    %c0_i32_0 = arith.constant 0 : i32
    %c0_i32_1 = arith.constant 0 : i32
    return %c0_i32, %c0_i32_0 : i32, i32
  }
  func.func @transform_8(%arg0: i32) -> (i32, i32) {
    %c0_i32 = arith.constant 0 : i32
    %c0_i32_0 = arith.constant 0 : i32
    %c0_i32_1 = arith.constant 0 : i32
    return %c0_i32, %c0_i32_0 : i32, i32
  }
  func.func @transform_9(%arg0: i32) -> (i32, i32) {
    %c0_i32 = arith.constant 0 : i32
    %c0_i32_0 = arith.constant 0 : i32
    %c0_i32_1 = arith.constant 0 : i32
    return %c0_i32, %c0_i32_0 : i32, i32
  }
}

</mosaic_0001>

<bundles_post_ra>
// kernel: ser_model_head.1
= control target key start
LH: loop header
LB: loop body
LE: loop exit
PB: predicated region body
PF: predicated region fallthrough
CT: control target
= control target key end

     0   :  { %14 = vsyncpa [#allocation3], 0  ;;  %s6975_s0 = inlined_call_operand.vmem [shape: bf16[6,2048], index: 0, kind: input, shape index: {}]   ;;  %s6976_s1 = inlined_call_operand.vmem [shape: bf16[2048,384], index: 1, kind: input, shape index: {}]   ;;  %s6977_s2 = inlined_call_operand.vmem [shape: f32[1,384], index: 2, kind: input, shape index: {}]   ;;  %s6978_s3 = inlined_call_operand.vmem [shape: f32[384,128], index: 3, kind: input, shape index: {}]   ;;  %s6979_s4 = inlined_call_operand.vmem [shape: f32[1,128], index: 4, kind: input, shape index: {}]   ;;  %s6980_s5 = inlined_call_operand.hbm [shape: f32[128,128], index: 5, kind: input, shape index: {}]   ;;  %s6981_s6 = inlined_call_operand.vmem [shape: f32[1,128], index: 6, kind: input, shape index: {}]   ;;  %s6982_s7 = inlined_call_operand.hbm [shape: f32[128,128], index: 7, kind: input, shape index: {}]   ;;  %s6983_s8 = inlined_call_operand.vmem [shape: f32[1,128], index: 8, kind: input, shape index: {}]   ;;  %s6984_s9 = inlined_call_operand.vmem [shape: f32[2,384], index: 9, kind: output, shape index: {}]  }
   0x1   :  { %15 = vsyncpa [#allocation5], 0  ;;  %s5393_s30 = smov [#allocation2]   ;;  %s5345_s13 = scalar_lea.hbm %s6980_s5, 2048 }
   0x2   :  { %s31_s10 = sshll.u32 %s5393_s30, 4  ;;  %p5346_p0 = scmp.ne.s32.totalorder %s6980_s5, %s5345_s13  ;;  %s32_s10 = int_to_ptr.vmem [resolvable:$true] %s31_s10 }
   0x3   :  { %p5349_p1 = scmp.lt.u32.totalorder %s5345_s13, %s6980_s5 }
   0x5   :  { %p5351_p2 = pnand %p5349_p1, %p5346_p0 }
   0x7   :  { %5354 = shalt.err (!%p5351_p2)
}
   0x8   :  { %s5355_s18 = scalar_lea.vmem %s32_s10, 2048  ;;  %p5360_p4 = scmp.lt.s32.totalorder %s32_s10, %s32_s10 }
   0x9   :  { %p5356_p3 = scmp.ne.s32.totalorder %s32_s10, %s5355_s18  ;;  %p5361_p5 = scmp.lt.s32.totalorder %s5355_s18, %s5355_s18 }
   0xb   :  { %p5362_p6 = por %p5361_p5, %p5360_p4 }
   0xd   :  { %p5363_p7 = pnand %p5362_p6, %p5356_p3 }
   0xf   :  { %5366 = shalt.err (!%p5363_p7)
}
  0x10   :  { %s5394_s19 = smov 128   ;;  %s5395_s20 = smov 8  }
  0x11   :  { %37 = dma.hbm_to_vmem [thread:$0]  %s6980_s5, 2048, %s32_s10, [#allocation3], %s5394_s19, %s5394_s19, %s5395_s20  }
  0x12   :  { %s5396_s23 = smov [#allocation4]   ;;  %s5367_s27 = scalar_lea.hbm %s6982_s7, 2048 }
  0x13   :  { %s45_s24 = sshll.u32 %s5396_s23, 4  ;;  %p5368_p8 = scmp.ne.s32.totalorder %s6982_s7, %s5367_s27  ;;  %s46_s24 = int_to_ptr.vmem [resolvable:$true] %s45_s24 }
  0x14   :  { %p5371_p9 = scmp.lt.u32.totalorder %s5367_s27, %s6982_s7 }
  0x16   :  { %p5373_p10 = pnand %p5371_p9, %p5368_p8 }
  0x18   :  { %5376 = shalt.err (!%p5373_p10)
}
  0x19   :  { %s5377_s12 = scalar_lea.vmem %s46_s24, 2048  ;;  %p5382_p12 = scmp.lt.s32.totalorder %s46_s24, %s46_s24 }
  0x1a   :  { %p5378_p11 = scmp.ne.s32.totalorder %s46_s24, %s5377_s12  ;;  %p5383_p13 = scmp.lt.s32.totalorder %s5377_s12, %s5377_s12 }
  0x1c   :  { %p5384_p0 = por %p5383_p13, %p5382_p12 }
  0x1e   :  { %p5385_p1 = pnand %p5384_p0, %p5378_p11 }
  0x20   :  { %5388 = shalt.err (!%p5385_p1)
}
  0x21   :  { %51 = dma.hbm_to_vmem [thread:$0]  %s6982_s7, 2048, %s46_s24, [#allocation5], %s5394_s19, %s5394_s19, %s5395_s20  }
  0x22   :  { %5389 = dma.done.wait [#allocation3], 2048  }
  0x23   :  { %5390 = vsyncadd [#allocation3], 4294965248 }
  0x24   :  { %5391 = dma.done.wait [#allocation5], 2048  }
  0x25   :  { %5392 = vsyncadd [#allocation5], 4294965248  ;;  %v4817_v0 = vld [vmem:[%s6976_s1 + $0x4] ss:$12 sps:$4 sm:$0xff]   ;;  %v4821_v2 = vld [vmem:[%s6976_s1] ss:$12 sps:$4 sm:$0xff]  }
  0x26   :  { %v4819_v1 = vld [vmem:[%s6976_s1 + $0x184] ss:$12 sps:$4 sm:$0xff]   ;;  %2702 = vmatprep.subr.bf16.mxu1 %v4817_v0  ;;  %v4822_v3 = vld [vmem:[%s6976_s1 + $0x180] ss:$12 sps:$4 sm:$0xff]   ;;  %v4823_v4 = vld [vmem:[%s6976_s1 + $0x1c] ss:$12 sps:$4 sm:$0xff]  }
  0x27   :  { %2743 = vmatprep.subr.bf16.mxu0 %v4819_v1  ;;  %2703 = vmatpush1.bf16.msra.mxu1 %v4821_v2  ;;  %v4825_v5 = vld [vmem:[%s6976_s1 + $0x19c] ss:$12 sps:$4 sm:$0xff]   ;;  %v4827_v6 = vld [vmem:[%s6976_s1 + $0x18] ss:$12 sps:$4 sm:$0xff]   ;;  %v4829_v8 = vld [vmem:[%s6976_s1 + $0x34] ss:$12 sps:$4 sm:$0xff]  }
  0x28   :  { %2744 = vmatpush1.bf16.msra.mxu0 %v4822_v3  ;;  %2704 = vmatprep.subr.bf16.mxu1 %v4823_v4  ;;  %v4828_v7 = vld [vmem:[%s6976_s1 + $0x198] ss:$12 sps:$4 sm:$0xff]   ;;  %v4831_v9 = vld [vmem:[%s6976_s1 + $0x1b4] ss:$12 sps:$4 sm:$0xff]   ;;  %v4833_v10 = vld [vmem:[%s6976_s1 + $0x30] ss:$12 sps:$4 sm:$0xff]  }
  0x29   :  { %2745 = vmatprep.subr.bf16.mxu0 %v4825_v5  ;;  %v4834_v11 = vld [vmem:[%s6976_s1 + $0x1b0] ss:$12 sps:$4 sm:$0xff]   ;;  %v4835_v12 = vld [vmem:[%s6976_s1 + $0x4c] ss:$12 sps:$4 sm:$0xff]   ;;  %v4839_v14 = vld [vmem:[%s6976_s1 + $0x48] ss:$12 sps:$4 sm:$0xff]  }
  0x2a   :  { %v4837_v13 = vld [vmem:[%s6976_s1 + $0x1cc] ss:$12 sps:$4 sm:$0xff]   ;;  %v4840_v15 = vld [vmem:[%s6976_s1 + $0x1c8] ss:$12 sps:$4 sm:$0xff]   ;;  %v4841_v16 = vld [vmem:[%s6976_s1 + $0x64] ss:$12 sps:$4 sm:$0xff]  }
  0x2b   :  { %2705 = vmatpush1.bf16.msra.mxu1 %v4827_v6  ;;  %v4843_v17 = vld [vmem:[%s6976_s1 + $0x1e4] ss:$12 sps:$4 sm:$0xff]   ;;  %v4845_v18 = vld [vmem:[%s6976_s1 + $0x60] ss:$12 sps:$4 sm:$0xff]   ;;  %v4847_v20 = vld [vmem:[%s6976_s1 + $0x7c] ss:$12 sps:$4 sm:$0xff]  }
  0x2c   :  { %2746 = vmatpush1.bf16.msra.mxu0 %v4828_v7  ;;  %2706 = vmatprep.subr.bf16.mxu1 %v4829_v8  ;;  %v4846_v19 = vld [vmem:[%s6976_s1 + $0x1e0] ss:$12 sps:$4 sm:$0xff]   ;;  %v4849_v21 = vld [vmem:[%s6976_s1 + $0x1fc] ss:$12 sps:$4 sm:$0xff]   ;;  %v4851_v22 = vld [vmem:[%s6976_s1 + $0x78] ss:$12 sps:$4 sm:$0xff]  }
  0x2d   :  { %2747 = vmatprep.subr.bf16.mxu0 %v4831_v9  ;;  %v4852_v23 = vld [vmem:[%s6976_s1 + $0x1f8] ss:$12 sps:$4 sm:$0xff]   ;;  %v4853_v24 = vld [vmem:[%s6976_s1 + $0x94] ss:$12 sps:$4 sm:$0xff]   ;;  %v4857_v26 = vld [vmem:[%s6976_s1 + $0x90] ss:$12 sps:$4 sm:$0xff]  }
  0x2e   :  { %v4855_v25 = vld [vmem:[%s6976_s1 + $0x214] ss:$12 sps:$4 sm:$0xff]   ;;  %v4858_v27 = vld [vmem:[%s6976_s1 + $0x210] ss:$12 sps:$4 sm:$0xff]   ;;  %v4859_v28 = vld [vmem:[%s6976_s1 + $0xac] ss:$12 sps:$4 sm:$0xff]  }
  0x2f   :  { %2707 = vmatpush1.bf16.msra.mxu1 %v4833_v10  ;;  %v4861_v29 = vld [vmem:[%s6976_s1 + $0x22c] ss:$12 sps:$4 sm:$0xff]   ;;  %v4863_v30 = vld [vmem:[%s6976_s1 + $0xa8] ss:$12 sps:$4 sm:$0xff]   ;;  %v4865_v32 = vld [vmem:[%s6976_s1 + $0xc4] ss:$12 sps:$4 sm:$0xff]  }
  0x30   :  { %2748 = vmatpush1.bf16.msra.mxu0 %v4834_v11  ;;  %2708 = vmatprep.subr.bf16.mxu1 %v4835_v12  ;;  %v4864_v31 = vld [vmem:[%s6976_s1 + $0x228] ss:$12 sps:$4 sm:$0xff]   ;;  %v4867_v33 = vld [vmem:[%s6976_s1 + $0x244] ss:$12 sps:$4 sm:$0xff]   ;;  %v4869_v34 = vld [vmem:[%s6976_s1 + $0xc0] ss:$12 sps:$4 sm:$0xff]  }
  0x31   :  { %2749 = vmatprep.subr.bf16.mxu0 %v4837_v13  ;;  %v4870_v35 = vld [vmem:[%s6976_s1 + $0x240] ss:$12 sps:$4 sm:$0xff]   ;;  %v4871_v36 = vld [vmem:[%s6976_s1 + $0xdc] ss:$12 sps:$4 sm:$0xff]   ;;  %v4875_v38 = vld [vmem:[%s6976_s1 + $0xd8] ss:$12 sps:$4 sm:$0xff]  }
  0x32   :  { %v4873_v37 = vld [vmem:[%s6976_s1 + $0x25c] ss:$12 sps:$4 sm:$0xff]   ;;  %v4876_v39 = vld [vmem:[%s6976_s1 + $0x258] ss:$12 sps:$4 sm:$0xff]   ;;  %v4877_v40 = vld [vmem:[%s6976_s1 + $0xf4] ss:$12 sps:$4 sm:$0xff]  }
  0x33   :  { %2709 = vmatpush1.bf16.msra.mxu1 %v4839_v14  ;;  %v4879_v41 = vld [vmem:[%s6976_s1 + $0x274] ss:$12 sps:$4 sm:$0xff]   ;;  %v4881_v42 = vld [vmem:[%s6976_s1 + $0xf0] ss:$12 sps:$4 sm:$0xff]   ;;  %v4883_v44 = vld [vmem:[%s6976_s1 + $0x10c] ss:$12 sps:$4 sm:$0xff]  }
  0x34   :  { %2750 = vmatpush1.bf16.msra.mxu0 %v4840_v15  ;;  %2710 = vmatprep.subr.bf16.mxu1 %v4841_v16  ;;  %v4882_v43 = vld [vmem:[%s6976_s1 + $0x270] ss:$12 sps:$4 sm:$0xff]   ;;  %v4885_v45 = vld [vmem:[%s6976_s1 + $0x28c] ss:$12 sps:$4 sm:$0xff]   ;;  %v4887_v46 = vld [vmem:[%s6976_s1 + $0x108] ss:$12 sps:$4 sm:$0xff]  }
  0x35   :  { %2751 = vmatprep.subr.bf16.mxu0 %v4843_v17  ;;  %v61_v47 = vld [vmem:[%s6975_s0] sm:$0x77]  ;;  %v62_v49 = vld [vmem:[%s6975_s0 + $0x8] sm:$0x77]  ;;  %v4905_v62 = vld [vmem:[%s6976_s1 + $0x150] ss:$12 sps:$4 sm:$0xff]  }
  0x36   :  { %v5618_v48 = vcombine.high %v61_v47, %v61_v47  ;;  %v4888_v50 = vld [vmem:[%s6976_s1 + $0x288] ss:$12 sps:$4 sm:$0xff]   ;;  %v4889_v51 = vld [vmem:[%s6976_s1 + $0x124] ss:$12 sps:$4 sm:$0xff]   ;;  %v5629_v52 = vcombine.high %v62_v49, %v62_v49  ;;  %v4893_v54 = vld [vmem:[%s6976_s1 + $0x120] ss:$12 sps:$4 sm:$0xff]   ;;  %v5684_v6 = vcombine.low %v61_v47, %v61_v47  ;;  %v5686_v7 = vcombine.low %v62_v49, %v62_v49 }
  0x37   :  { %2711 = vmatpush1.bf16.msra.mxu1 %v4845_v18  ;;  %v4891_v53 = vld [vmem:[%s6976_s1 + $0x2a4] ss:$12 sps:$4 sm:$0xff]   ;;  %v4894_v55 = vld [vmem:[%s6976_s1 + $0x2a0] ss:$12 sps:$4 sm:$0xff]   ;;  %v4895_v56 = vld [vmem:[%s6976_s1 + $0x13c] ss:$12 sps:$4 sm:$0xff]  }
  0x38   :  { %2752 = vmatpush1.bf16.msra.mxu0 %v4846_v19  ;;  %2712 = vmatprep.subr.bf16.mxu1 %v4847_v20  ;;  %v4897_v57 = vld [vmem:[%s6976_s1 + $0x2bc] ss:$12 sps:$4 sm:$0xff]   ;;  %v4899_v58 = vld [vmem:[%s6976_s1 + $0x138] ss:$12 sps:$4 sm:$0xff]   ;;  %v4901_v60 = vld [vmem:[%s6976_s1 + $0x154] ss:$12 sps:$4 sm:$0xff]  }
  0x39   :  { %2753 = vmatprep.subr.bf16.mxu0 %v4849_v21  ;;  %2734 = vmatprep.mubr.bf16.mxu1 %v5618_v48  ;;  %v4900_v59 = vld [vmem:[%s6976_s1 + $0x2b8] ss:$12 sps:$4 sm:$0xff]   ;;  %v4903_v61 = vld [vmem:[%s6976_s1 + $0x2d4] ss:$12 sps:$4 sm:$0xff]   ;;  %v4906_v63 = vld [vmem:[%s6976_s1 + $0x2d0] ss:$12 sps:$4 sm:$0xff]  }
  0x3a   :  { %2775 = vmatprep.mubr.bf16.mxu0 %v5629_v52  ;;  %v4907_v0 = vld [vmem:[%s6976_s1 + $0x16c] ss:$12 sps:$4 sm:$0xff]   ;;  %v4911_v2 = vld [vmem:[%s6976_s1 + $0x168] ss:$12 sps:$4 sm:$0xff]   ;;  %v4919_v4 = vld [vmem:[%s6976_s1 + $0x304] ss:$12 sps:$4 sm:$0xff]  }
  0x3b   :  { %2713 = vmatpush1.bf16.msra.mxu1 %v4851_v22  ;;  %v4909_v1 = vld [vmem:[%s6976_s1 + $0x2ec] ss:$12 sps:$4 sm:$0xff]   ;;  %v4912_v3 = vld [vmem:[%s6976_s1 + $0x2e8] ss:$12 sps:$4 sm:$0xff]   ;;  %v4927_v16 = vld [vmem:[%s6976_s1 + $0x330] ss:$12 sps:$4 sm:$0xff]  }
  0x3c   :  { %2754 = vmatpush1.bf16.msra.mxu0 %v4852_v23  ;;  %2714 = vmatprep.subr.bf16.mxu1 %v4853_v24  ;;  %v4920_v5 = vld [vmem:[%s6976_s1 + $0xc8] ss:$12 sps:$4 sm:$0xff]   ;;  %v4917_v8 = vld [vmem:[%s6976_s1 + $0x300] ss:$12 sps:$4 sm:$0xff]   ;;  %v4922_v12 = vld [vmem:[%s6976_s1 + $0x318] ss:$12 sps:$4 sm:$0xff]  }
  0x3d   :  { %2755 = vmatprep.subr.bf16.mxu0 %v4855_v25  ;;  %v4921_v9 = vld [vmem:[%s6976_s1 + $0x8] ss:$12 sps:$4 sm:$0xff]   ;;  %v4925_v11 = vld [vmem:[%s6976_s1 + $0xe0] ss:$12 sps:$4 sm:$0xff]   ;;  %v4930_v15 = vld [vmem:[%s6976_s1 + $0xf8] ss:$12 sps:$4 sm:$0xff]  }
  0x3e   :  { %v4924_v10 = vld [vmem:[%s6976_s1 + $0x31c] ss:$12 sps:$4 sm:$0xff]   ;;  %v4926_v13 = vld [vmem:[%s6976_s1 + $0x20] ss:$12 sps:$4 sm:$0xff]   ;;  %v4931_v17 = vld [vmem:[%s6976_s1 + $0x38] ss:$12 sps:$4 sm:$0xff]  }
  0x3f   :  { %2715 = vmatpush1.bf16.msra.mxu1 %v4857_v26  ;;  %v4929_v14 = vld [vmem:[%s6976_s1 + $0x334] ss:$12 sps:$4 sm:$0xff]   ;;  %v4934_v18 = vld [vmem:[%s6976_s1 + $0x34c] ss:$12 sps:$4 sm:$0xff]   ;;  %v4935_v19 = vld [vmem:[%s6976_s1 + $0x110] ss:$12 sps:$4 sm:$0xff]  }
  0x40   :  { %2756 = vmatpush1.bf16.msra.mxu0 %v4858_v27  ;;  %2716 = vmatprep.subr.bf16.mxu1 %v4859_v28  ;;  %v4932_v20 = vld [vmem:[%s6976_s1 + $0x348] ss:$12 sps:$4 sm:$0xff]   ;;  %v4936_v21 = vld [vmem:[%s6976_s1 + $0x50] ss:$12 sps:$4 sm:$0xff]   ;;  %v4937_v24 = vld [vmem:[%s6976_s1 + $0x360] ss:$12 sps:$4 sm:$0xff]  }
  0x41   :  { %2757 = vmatprep.subr.bf16.mxu0 %v4861_v29  ;;  %v4939_v22 = vld [vmem:[%s6976_s1 + $0x364] ss:$12 sps:$4 sm:$0xff]   ;;  %v4940_v23 = vld [vmem:[%s6976_s1 + $0x128] ss:$12 sps:$4 sm:$0xff]   ;;  %v4945_v27 = vld [vmem:[%s6976_s1 + $0x140] ss:$12 sps:$4 sm:$0xff]  }
  0x42   :  { %v4941_v25 = vld [vmem:[%s6976_s1 + $0x68] ss:$12 sps:$4 sm:$0xff]   ;;  %v4942_v28 = vld [vmem:[%s6976_s1 + $0x378] ss:$12 sps:$4 sm:$0xff]   ;;  %v4946_v29 = vld [vmem:[%s6976_s1 + $0x80] ss:$12 sps:$4 sm:$0xff]  }
  0x43   :  { %2717 = vmatpush1.bf16.msra.mxu1 %v4863_v30  ;;  %v4944_v26 = vld [vmem:[%s6976_s1 + $0x37c] ss:$12 sps:$4 sm:$0xff]   ;;  %v4949_v30 = vld [vmem:[%s6976_s1 + $0x394] ss:$12 sps:$4 sm:$0xff]   ;;  %v4970_v49 = vld [vmem:[%s6976_s1 + $0x278] ss:$12 sps:$4 sm:$0xff]  }
  0x44   :  { %2758 = vmatpush1.bf16.msra.mxu0 %v4864_v31  ;;  %2718 = vmatprep.subr.bf16.mxu1 %v4865_v32  ;;  %v4950_v31 = vld [vmem:[%s6976_s1 + $0x158] ss:$12 sps:$4 sm:$0xff]   ;;  %v4947_v32 = vld [vmem:[%s6976_s1 + $0x390] ss:$12 sps:$4 sm:$0xff]   ;;  %v4966_v47 = vld [vmem:[%s6976_s1 + $0x1a0] ss:$12 sps:$4 sm:$0xff]  }
  0x45   :  { %2759 = vmatprep.subr.bf16.mxu0 %v4867_v33  ;;  %v4951_v33 = vld [vmem:[%s6976_s1 + $0x98] ss:$12 sps:$4 sm:$0xff]   ;;  %vm5398_vm0 = vmmov 0  }
  0x47   :  { %2719 = vmatpush1.bf16.msra.mxu1 %v4869_v34  ;;  %v4954_v34 = vld [vmem:[%s6976_s1 + $0x3ac] ss:$12 sps:$4 sm:$0xff]  }
  0x48   :  { %2760 = vmatpush1.bf16.msra.mxu0 %v4870_v35  ;;  %2720 = vmatprep.subr.bf16.mxu1 %v4871_v36  ;;  %v4955_v35 = vld [vmem:[%s6976_s1 + $0x170] ss:$12 sps:$4 sm:$0xff]   ;;  %v4952_v36 = vld [vmem:[%s6976_s1 + $0x3a8] ss:$12 sps:$4 sm:$0xff]  }
  0x49   :  { %2761 = vmatprep.subr.bf16.mxu0 %v4873_v37  ;;  %v4956_v37 = vld [vmem:[%s6976_s1 + $0xb0] ss:$12 sps:$4 sm:$0xff]  }
  0x4b   :  { %2721 = vmatpush1.bf16.msra.mxu1 %v4875_v38  ;;  %v4959_v38 = vld [vmem:[%s6976_s1 + $0x3c4] ss:$12 sps:$4 sm:$0xff]  }
  0x4c   :  { %2762 = vmatpush1.bf16.msra.mxu0 %v4876_v39  ;;  %2722 = vmatprep.subr.bf16.mxu1 %v4877_v40  ;;  %v4960_v39 = vld [vmem:[%s6976_s1 + $0x248] ss:$12 sps:$4 sm:$0xff]   ;;  %v4957_v40 = vld [vmem:[%s6976_s1 + $0x3c0] ss:$12 sps:$4 sm:$0xff]  }
  0x4d   :  { %2763 = vmatprep.subr.bf16.mxu0 %v4879_v41  ;;  %v4961_v41 = vld [vmem:[%s6976_s1 + $0x188] ss:$12 sps:$4 sm:$0xff]  }
  0x4f   :  { %2723 = vmatpush1.bf16.msra.mxu1 %v4881_v42  ;;  %v4964_v42 = vld [vmem:[%s6976_s1 + $0x3dc] ss:$12 sps:$4 sm:$0xff]  }
  0x50   :  { %2764 = vmatpush1.bf16.msra.mxu0 %v4882_v43  ;;  %2724 = vmatprep.subr.bf16.mxu1 %v4883_v44  ;;  %v5799_v43 = vld [vmem:[%s6975_s0 + $0x10] sm:$0x77]  ;;  %v4965_v44 = vld [vmem:[%s6976_s1 + $0x260] ss:$12 sps:$4 sm:$0xff]  }
  0x51   :  { %2765 = vmatprep.subr.bf16.mxu0 %v4885_v45  ;;  %v5806_v45 = vcombine.high %v5799_v43, %v5799_v43 }
  0x53   :  { %2725 = vmatpush1.bf16.msra.mxu1 %v4887_v46  ;;  %v4962_v46 = vld [vmem:[%s6976_s1 + $0x3d8] ss:$12 sps:$4 sm:$0xff]  }
  0x54   :  { %2766 = vmatpush1.bf16.msra.mxu0 %v4888_v50  ;;  %2726 = vmatprep.subr.bf16.mxu1 %v4889_v51  ;;  %v4967_v50 = vld [vmem:[%s6976_s1 + $0x3f0] ss:$12 sps:$4 sm:$0xff]   ;;  %v4971_v51 = vld [vmem:[%s6976_s1 + $0x1b8] ss:$12 sps:$4 sm:$0xff]  }
  0x55   :  { %2767 = vmatprep.subr.bf16.mxu0 %v4891_v53  ;;  %v4974_v53 = vld [vmem:[%s6976_s1 + $0x40c] ss:$12 sps:$4 sm:$0xff]  }
  0x57   :  { %2727 = vmatpush1.bf16.msra.mxu1 %v4893_v54  ;;  %v4972_v54 = vld [vmem:[%s6976_s1 + $0x408] ss:$12 sps:$4 sm:$0xff]  }
  0x58   :  { %2768 = vmatpush1.bf16.msra.mxu0 %v4894_v55  ;;  %2728 = vmatprep.subr.bf16.mxu1 %v4895_v56  ;;  %v4976_v55 = vld [vmem:[%s6976_s1 + $0x1d0] ss:$12 sps:$4 sm:$0xff]  }
  0x59   :  { %2769 = vmatprep.subr.bf16.mxu0 %v4897_v57  ;;  %v4979_v56 = vld [vmem:[%s6976_s1 + $0x424] ss:$12 sps:$4 sm:$0xff]   ;;  %v4980_v57 = vld [vmem:[%s6976_s1 + $0x2a8] ss:$12 sps:$4 sm:$0xff]  }
  0x5b   :  { %2729 = vmatpush1.bf16.msra.mxu1 %v4899_v58  ;;  %v4977_v58 = vld [vmem:[%s6976_s1 + $0x420] ss:$12 sps:$4 sm:$0xff]  }
  0x5c   :  { %2770 = vmatpush1.bf16.msra.mxu0 %v4900_v59  ;;  %2730 = vmatprep.subr.bf16.mxu1 %v4901_v60  ;;  %v4981_v59 = vld [vmem:[%s6976_s1 + $0x1e8] ss:$12 sps:$4 sm:$0xff]  }
  0x5d   :  { %2771 = vmatprep.subr.bf16.mxu0 %v4903_v61  ;;  %v4984_v60 = vld [vmem:[%s6976_s1 + $0x43c] ss:$12 sps:$4 sm:$0xff]   ;;  %v4985_v61 = vld [vmem:[%s6976_s1 + $0x2c0] ss:$12 sps:$4 sm:$0xff]  }
  0x5f   :  { %2731 = vmatpush1.bf16.msra.mxu1 %v4905_v62  ;;  %v4982_v62 = vld [vmem:[%s6976_s1 + $0x438] ss:$12 sps:$4 sm:$0xff]  }
  0x60   :  { %2772 = vmatpush1.bf16.msra.mxu0 %v4906_v63  ;;  %2732 = vmatprep.subr.bf16.mxu1 %v4907_v0  ;;  %v4986_v63 = vld [vmem:[%s6976_s1 + $0x200] ss:$12 sps:$4 sm:$0xff]  }
  0x61   :  { %2773 = vmatprep.subr.bf16.mxu0 %v4909_v1  ;;  %v4989_v0 = vld [vmem:[%s6976_s1 + $0x454] ss:$12 sps:$4 sm:$0xff]   ;;  %v4990_v1 = vld [vmem:[%s6976_s1 + $0x2d8] ss:$12 sps:$4 sm:$0xff]  }
  0x63   :  { %2733 = vmatpush1.bf16.msra.mxu1 %v4911_v2  ;;  %v4987_v2 = vld [vmem:[%s6976_s1 + $0x450] ss:$12 sps:$4 sm:$0xff]  }
  0x64   :  { %2774 = vmatpush1.bf16.msra.mxu0 %v4912_v3  ;;  %4226 = vmatprep.subr.bf16.mxu1 %v4920_v5  ;;  %v4991_v3 = vld [vmem:[%s6976_s1 + $0x218] ss:$12 sps:$4 sm:$0xff]   ;;  %v4995_v5 = vld [vmem:[%s6976_s1 + $0x2f0] ss:$12 sps:$4 sm:$0xff]  }
  0x65   :  { %2784 = vmatprep.subr.bf16.mxu0 %v4919_v4  ;;  %v4994_v4 = vld [vmem:[%s6976_s1 + $0x46c] ss:$12 sps:$4 sm:$0xff]  }
  0x66   :  { %2735 = vmatmul.mubr.bf16.vlgmr.msra.gmra.mrb[0].mxu1 %v5684_v6 }
  0x67   :  { %2776 = vmatmul.mubr.bf16.vlgmr.msra.gmra.mrb[0].mxu0 %v5686_v7  ;;  %4227 = vmatpush3.bf16.msra.mxu1 %v4921_v9  ;;  %v5001_v9 = vld [vmem:[%s6976_s1 + $0x484] ss:$12 sps:$4 sm:$0xff]  }
  0x68   :  { %2785 = vmatpush1.bf16.msra.mxu0 %v4917_v8  ;;  %4228 = vmatprep.subr.bf16.mxu1 %v4925_v11  ;;  %v4996_v8 = vld [vmem:[%s6976_s1 + $0x230] ss:$12 sps:$4 sm:$0xff]   ;;  %v4999_v11 = vld [vmem:[%s6976_s1 + $0x480] ss:$12 sps:$4 sm:$0xff]  }
  0x69   :  { %2786 = vmatprep.subr.bf16.mxu0 %v4924_v10  ;;  %3062 = vmatprep.mubr.bf16.mxu1 %v5618_v48  ;;  %v4969_v48 = vld [vmem:[%s6976_s1 + $0x3f4] ss:$12 sps:$4 sm:$0xff]  }
  0x6a   :  { %2816 = vmatprep.mubr.bf16.mxu0 %v5806_v45  ;;  %v5002_v10 = vld [vmem:[%s6976_s1 + $0x3c8] ss:$12 sps:$4 sm:$0xff]  }
  0x6b   :  { %4229 = vmatpush3.bf16.msra.mxu1 %v4926_v13  ;;  %v5003_v13 = vld [vmem:[%s6976_s1 + $0x308] ss:$12 sps:$4 sm:$0xff]  }
  0x6c   :  { %2787 = vmatpush1.bf16.msra.mxu0 %v4922_v12  ;;  %4230 = vmatprep.subr.bf16.mxu1 %v4930_v15  ;;  %v5900_v12 = vcombine.low %v5799_v43, %v5799_v43  ;;  %v5007_v15 = vld [vmem:[%s6976_s1 + $0x3e0] ss:$12 sps:$4 sm:$0xff]   ;;  %v5041_v43 = vld [vmem:[%s6976_s1 + $0x544] ss:$12 sps:$4 sm:$0xff]  }
  0x6d   :  { %2788 = vmatprep.subr.bf16.mxu0 %v4929_v14  ;;  %v5006_v14 = vld [vmem:[%s6976_s1 + $0x49c] ss:$12 sps:$4 sm:$0xff]  }
  0x6f   :  { %4231 = vmatpush3.bf16.msra.mxu1 %v4931_v17  ;;  %v5008_v17 = vld [vmem:[%s6976_s1 + $0x320] ss:$12 sps:$4 sm:$0xff]  }
  0x70   :  { %2789 = vmatpush1.bf16.msra.mxu0 %v4927_v16  ;;  %4232 = vmatprep.subr.bf16.mxu1 %v4935_v19  ;;  %v5004_v16 = vld [vmem:[%s6976_s1 + $0x498] ss:$12 sps:$4 sm:$0xff]   ;;  %v5009_v19 = vld [vmem:[%s6976_s1 + $0x4b0] ss:$12 sps:$4 sm:$0xff]  }
  0x71   :  { %2790 = vmatprep.subr.bf16.mxu0 %v4934_v18  ;;  %v5011_v18 = vld [vmem:[%s6976_s1 + $0x4b4] ss:$12 sps:$4 sm:$0xff]  }
  0x73   :  { %4233 = vmatpush3.bf16.msra.mxu1 %v4936_v21  ;;  %v5016_v21 = vld [vmem:[%s6976_s1 + $0x4cc] ss:$12 sps:$4 sm:$0xff]  }
  0x74   :  { %2791 = vmatpush1.bf16.msra.mxu0 %v4932_v20  ;;  %4234 = vmatprep.subr.bf16.mxu1 %v4940_v23  ;;  %v5013_v20 = vld [vmem:[%s6976_s1 + $0x338] ss:$12 sps:$4 sm:$0xff]   ;;  %v5014_v23 = vld [vmem:[%s6976_s1 + $0x4c8] ss:$12 sps:$4 sm:$0xff]  }
  0x75   :  { %2792 = vmatprep.subr.bf16.mxu0 %v4939_v22  ;;  %v5017_v22 = vld [vmem:[%s6976_s1 + $0x410] ss:$12 sps:$4 sm:$0xff]  }
  0x77   :  { %4235 = vmatpush3.bf16.msra.mxu1 %v4941_v25  ;;  %v5021_v25 = vld [vmem:[%s6976_s1 + $0x4e4] ss:$12 sps:$4 sm:$0xff]  }
  0x78   :  { %2793 = vmatpush1.bf16.msra.mxu0 %v4937_v24  ;;  %4236 = vmatprep.subr.bf16.mxu1 %v4945_v27  ;;  %v5018_v24 = vld [vmem:[%s6976_s1 + $0x350] ss:$12 sps:$4 sm:$0xff]   ;;  %v5019_v27 = vld [vmem:[%s6976_s1 + $0x4e0] ss:$12 sps:$4 sm:$0xff]  }
  0x79   :  { %2794 = vmatprep.subr.bf16.mxu0 %v4944_v26  ;;  %v5022_v26 = vld [vmem:[%s6976_s1 + $0x428] ss:$12 sps:$4 sm:$0xff]  }
  0x7b   :  { %4237 = vmatpush3.bf16.msra.mxu1 %v4946_v29  ;;  %v5026_v29 = vld [vmem:[%s6976_s1 + $0x4fc] ss:$12 sps:$4 sm:$0xff]  }
  0x7c   :  { %2795 = vmatpush1.bf16.msra.mxu0 %v4942_v28  ;;  %4238 = vmatprep.subr.bf16.mxu1 %v4950_v31  ;;  %v5023_v28 = vld [vmem:[%s6976_s1 + $0x368] ss:$12 sps:$4 sm:$0xff]   ;;  %v5024_v31 = vld [vmem:[%s6976_s1 + $0x4f8] ss:$12 sps:$4 sm:$0xff]  }
  0x7d   :  { %2796 = vmatprep.subr.bf16.mxu0 %v4949_v30  ;;  %v5027_v30 = vld [vmem:[%s6976_s1 + $0x440] ss:$12 sps:$4 sm:$0xff]  }
  0x7f   :  { %4239 = vmatpush3.bf16.msra.mxu1 %v4951_v33  ;;  %v5031_v33 = vld [vmem:[%s6976_s1 + $0x514] ss:$12 sps:$4 sm:$0xff]  }
  0x80   :  { %2797 = vmatpush1.bf16.msra.mxu0 %v4947_v32  ;;  %4240 = vmatprep.subr.bf16.mxu1 %v4955_v35  ;;  %v5028_v32 = vld [vmem:[%s6976_s1 + $0x380] ss:$12 sps:$4 sm:$0xff]   ;;  %v5977_v35 = vld [vmem:[%s6975_s0 + $0x18] sm:$0x77] }
  0x81   :  { %2798 = vmatprep.subr.bf16.mxu0 %v4954_v34  ;;  %v5032_v34 = vld [vmem:[%s6976_s1 + $0x458] ss:$12 sps:$4 sm:$0xff]  }
  0x83   :  { %4241 = vmatpush3.bf16.msra.mxu1 %v4956_v37  ;;  %v5033_v37 = vld [vmem:[%s6976_s1 + $0x398] ss:$12 sps:$4 sm:$0xff]  }
  0x84   :  { %2799 = vmatpush1.bf16.msra.mxu0 %v4952_v36  ;;  %4248 = vmatprep.subr.bf16.mxu1 %v4960_v39  ;;  %v5029_v36 = vld [vmem:[%s6976_s1 + $0x510] ss:$12 sps:$4 sm:$0xff]   ;;  %v5036_v39 = vld [vmem:[%s6976_s1 + $0x52c] ss:$12 sps:$4 sm:$0xff]  }
  0x85   :  { %2800 = vmatprep.subr.bf16.mxu0 %v4959_v38  ;;  %v3830_v38 = vcombine.high %v5977_v35, %v5977_v35 }
  0x86   :  { %3063 = vmatmul.mubr.bf16.vlgmr.msra.gmra.mrb[4].mxu1 %v5684_v6  ;;  %v4992_v6 = vld [vmem:[%s6976_s1 + $0x468] ss:$12 sps:$4 sm:$0xff]  }
  0x87   :  { %4249 = vmatpush3.bf16.msra.mxu1 %v4961_v41  ;;  %3102 = vmatprep.mubr.bf16.mxu1 %v5629_v52  ;;  %v4975_v52 = vld [vmem:[%s6976_s1 + $0x290] ss:$12 sps:$4 sm:$0xff]   ;;  %v5034_v41 = vld [vmem:[%s6976_s1 + $0x528] ss:$12 sps:$4 sm:$0xff]  }
  0x88   :  { %2801 = vmatpush1.bf16.msra.mxu0 %v4957_v40  ;;  %4250 = vmatprep.subr.bf16.mxu1 %v4965_v44  ;;  %v5037_v40 = vld [vmem:[%s6976_s1 + $0x470] ss:$12 sps:$4 sm:$0xff]   ;;  %v5042_v44 = vld [vmem:[%s6976_s1 + $0x548] ss:$12 sps:$4 sm:$0xff]  }
  0x89   :  { %2802 = vmatprep.subr.bf16.mxu0 %v4964_v42  ;;  %v5038_v42 = vld [vmem:[%s6976_s1 + $0x3b0] ss:$12 sps:$4 sm:$0xff]  }
  0x8b   :  { %4251 = vmatpush3.bf16.msra.mxu1 %v4966_v47  ;;  %v5046_v47 = vld [vmem:[%s6976_s1 + $0x55c] ss:$12 sps:$4 sm:$0xff]  }
  0x8c   :  { %2803 = vmatpush1.bf16.msra.mxu0 %v4962_v46  ;;  %4252 = vmatprep.subr.bf16.mxu1 %v4970_v49  ;;  %v5043_v46 = vld [vmem:[%s6976_s1 + $0x488] ss:$12 sps:$4 sm:$0xff]   ;;  %v5044_v49 = vld [vmem:[%s6976_s1 + $0x558] ss:$12 sps:$4 sm:$0xff]  }
  0x8d   :  { %2804 = vmatprep.subr.bf16.mxu0 %v4969_v48  ;;  %v5047_v48 = vld [vmem:[%s6976_s1 + $0x560] ss:$12 sps:$4 sm:$0xff]  }
  0x8f   :  { %4253 = vmatpush3.bf16.msra.mxu1 %v4971_v51  ;;  %v5051_v51 = vld [vmem:[%s6976_s1 + $0x574] ss:$12 sps:$4 sm:$0xff]  }
  0x90   :  { %2805 = vmatpush1.bf16.msra.mxu0 %v4967_v50  ;;  %4254 = vmatprep.subr.bf16.mxu1 %v4975_v52  ;;  %v5048_v50 = vld [vmem:[%s6976_s1 + $0x4a0] ss:$12 sps:$4 sm:$0xff]   ;;  %v5049_v52 = vld [vmem:[%s6976_s1 + $0x570] ss:$12 sps:$4 sm:$0xff]  }
  0x91   :  { %2806 = vmatprep.subr.bf16.mxu0 %v4974_v53  ;;  %v5052_v53 = vld [vmem:[%s6976_s1 + $0x578] ss:$12 sps:$4 sm:$0xff]  }
  0x93   :  { %4255 = vmatpush3.bf16.msra.mxu1 %v4976_v55  ;;  %v5056_v55 = vld [vmem:[%s6976_s1 + $0x58c] ss:$12 sps:$4 sm:$0xff]  }
  0x94   :  { %2807 = vmatpush1.bf16.msra.mxu0 %v4972_v54  ;;  %4256 = vmatprep.subr.bf16.mxu1 %v4980_v57  ;;  %v5053_v54 = vld [vmem:[%s6976_s1 + $0x4b8] ss:$12 sps:$4 sm:$0xff]   ;;  %v5054_v57 = vld [vmem:[%s6976_s1 + $0x588] ss:$12 sps:$4 sm:$0xff]  }
  0x95   :  { %2808 = vmatprep.subr.bf16.mxu0 %v4979_v56  ;;  %v5057_v56 = vld [vmem:[%s6976_s1 + $0x590] ss:$12 sps:$4 sm:$0xff]  }
  0x97   :  { %4257 = vmatpush3.bf16.msra.mxu1 %v4981_v59  ;;  %v5061_v59 = vld [vmem:[%s6976_s1 + $0x5a4] ss:$12 sps:$4 sm:$0xff]  }
  0x98   :  { %2809 = vmatpush1.bf16.msra.mxu0 %v4977_v58  ;;  %4258 = vmatprep.subr.bf16.mxu1 %v4985_v61  ;;  %v5058_v58 = vld [vmem:[%s6976_s1 + $0x4d0] ss:$12 sps:$4 sm:$0xff]   ;;  %v5059_v61 = vld [vmem:[%s6976_s1 + $0x5a0] ss:$12 sps:$4 sm:$0xff]  }
  0x99   :  { %2810 = vmatprep.subr.bf16.mxu0 %v4984_v60  ;;  %v5062_v60 = vld [vmem:[%s6976_s1 + $0x5a8] ss:$12 sps:$4 sm:$0xff]  }
  0x9b   :  { %4259 = vmatpush3.bf16.msra.mxu1 %v4986_v63  ;;  %v5066_v63 = vld [vmem:[%s6976_s1 + $0x5bc] ss:$12 sps:$4 sm:$0xff]  }
  0x9c   :  { %2811 = vmatpush1.bf16.msra.mxu0 %v4982_v62  ;;  %4260 = vmatprep.subr.bf16.mxu1 %v4990_v1  ;;  %v5063_v62 = vld [vmem:[%s6976_s1 + $0x4e8] ss:$12 sps:$4 sm:$0xff]   ;;  %v5064_v1 = vld [vmem:[%s6976_s1 + $0x5b8] ss:$12 sps:$4 sm:$0xff]  }
  0x9d   :  { %2812 = vmatprep.subr.bf16.mxu0 %v4989_v0  ;;  %v5067_v0 = vld [vmem:[%s6976_s1 + $0x5c0] ss:$12 sps:$4 sm:$0xff]  }
  0x9f   :  { %4261 = vmatpush3.bf16.msra.mxu1 %v4991_v3  ;;  %v5071_v3 = vld [vmem:[%s6976_s1 + $0x5d4] ss:$12 sps:$4 sm:$0xff]  }
  0xa0   :  { %2813 = vmatpush1.bf16.msra.mxu0 %v4987_v2  ;;  %4262 = vmatprep.subr.bf16.mxu1 %v4995_v5  ;;  %v5068_v2 = vld [vmem:[%s6976_s1 + $0x500] ss:$12 sps:$4 sm:$0xff]   ;;  %v5069_v5 = vld [vmem:[%s6976_s1 + $0x5d0] ss:$12 sps:$4 sm:$0xff]  }
  0xa1   :  { %2814 = vmatprep.subr.bf16.mxu0 %v4994_v4  ;;  %v5072_v4 = vld [vmem:[%s6976_s1 + $0x5d8] ss:$12 sps:$4 sm:$0xff]  }
  0xa3   :  { %4263 = vmatpush3.bf16.msra.mxu1 %v4996_v8  ;;  %v5076_v8 = vld [vmem:[%s6976_s1 + $0x5ec] ss:$12 sps:$4 sm:$0xff]  }
  0xa4   :  { %2815 = vmatpush1.bf16.msra.mxu0 %v4992_v6  ;;  %4270 = vmatprep.subr.bf16.mxu1 %v5002_v10  ;;  %v5073_v6 = vld [vmem:[%s6976_s1 + $0x518] ss:$12 sps:$4 sm:$0xff]   ;;  %v5074_v10 = vld [vmem:[%s6976_s1 + $0x5e8] ss:$12 sps:$4 sm:$0xff]  }
  0xa5   :  { %2825 = vmatprep.subr.bf16.mxu0 %v5001_v9  ;;  %v5077_v9 = vld [vmem:[%s6976_s1 + $0x5f0] ss:$12 sps:$4 sm:$0xff]  }
  0xa6   :  { %3103 = vmatmul.mubr.bf16.vlgmr.msra.gmra.mrb[8].mxu1 %v5686_v7  ;;  %v5012_v7 = vld [vmem:[%s6976_s1 + $0x3f8] ss:$12 sps:$4 sm:$0xff]  }
  0xa7   :  { %2817 = vmatmul.mubr.bf16.vlgmr.msra.gmra.mrb[0].mxu0 %v5900_v12  ;;  %4271 = vmatpush3.bf16.msra.mxu1 %v5003_v13  ;;  %v5084_v13 = vld [vmem:[%s6976_s1 + $0x6c8] ss:$12 sps:$4 sm:$0xff]  }
  0xa8   :  { %2826 = vmatpush1.bf16.msra.mxu0 %v4999_v11  ;;  %4272 = vmatprep.subr.bf16.mxu1 %v5007_v15  ;;  %v5078_v11 = vld [vmem:[%s6976_s1 + $0x530] ss:$12 sps:$4 sm:$0xff]   ;;  %v5085_v15 = vld [vmem:[%s6976_s1 + $0x608] ss:$12 sps:$4 sm:$0xff]  }
  0xa9   :  { %2827 = vmatprep.subr.bf16.mxu0 %v5006_v14  ;;  %3142 = vmatprep.mubr.bf16.mxu1 %v5806_v45  ;;  %v5039_v45 = vld [vmem:[%s6976_s1 + $0x540] ss:$12 sps:$4 sm:$0xff]  }
  0xaa   :  { %2857 = vmatprep.mubr.bf16.mxu0 %v3830_v38  ;;  %v5081_v14 = vld [vmem:[%s6976_s1 + $0x600] ss:$12 sps:$4 sm:$0xff]  }
  0xab   :  { %4273 = vmatpush3.bf16.msra.mxu1 %v5008_v17  ;;  %v6113_v17 = vld [vmem:[%s6975_s0 + $0x20] sm:$0x77] }
  0xac   :  { %2828 = vmatpush1.bf16.msra.mxu0 %v5004_v16  ;;  %4274 = vmatprep.subr.bf16.mxu1 %v5012_v7  ;;  %v3829_v16 = vcombine.low %v5977_v35, %v5977_v35  ;;  %v5089_v7 = vld [vmem:[%s6976_s1 + $0x6e0] ss:$12 sps:$4 sm:$0xff]  }
  0xad   :  { %2829 = vmatprep.subr.bf16.mxu0 %v5011_v18  ;;  %v5088_v18 = vld [vmem:[%s6976_s1 + $0x61c] ss:$12 sps:$4 sm:$0xff]   ;;  %v5109_v35 = vld [vmem:[%s6976_s1 + $0x740] ss:$12 sps:$4 sm:$0xff]  }
  0xaf   :  { %4275 = vmatpush3.bf16.msra.mxu1 %v5013_v20  ;;  %v5086_v20 = vld [vmem:[%s6976_s1 + $0x618] ss:$12 sps:$4 sm:$0xff]  }
  0xb0   :  { %2830 = vmatpush1.bf16.msra.mxu0 %v5009_v19  ;;  %4276 = vmatprep.subr.bf16.mxu1 %v5017_v22  ;;  %v3832_v19 = vcombine.high %v6113_v17, %v6113_v17  ;;  %v5093_v22 = vld [vmem:[%s6976_s1 + $0x634] ss:$12 sps:$4 sm:$0xff]  }
  0xb1   :  { %2831 = vmatprep.subr.bf16.mxu0 %v5016_v21  ;;  %v5090_v21 = vld [vmem:[%s6976_s1 + $0x620] ss:$12 sps:$4 sm:$0xff]  }
  0xb3   :  { %4277 = vmatpush3.bf16.msra.mxu1 %v5018_v24  ;;  %v5091_v24 = vld [vmem:[%s6976_s1 + $0x630] ss:$12 sps:$4 sm:$0xff]  }
  0xb4   :  { %2832 = vmatpush1.bf16.msra.mxu0 %v5014_v23  ;;  %4278 = vmatprep.subr.bf16.mxu1 %v5022_v26  ;;  %v5094_v23 = vld [vmem:[%s6976_s1 + $0x6f8] ss:$12 sps:$4 sm:$0xff]  }
  0xb5   :  { %2833 = vmatprep.subr.bf16.mxu0 %v5021_v25  ;;  %v5095_v25 = vld [vmem:[%s6976_s1 + $0x638] ss:$12 sps:$4 sm:$0xff]  }
  0xb6   :  { %v5098_v26 = vld [vmem:[%s6976_s1 + $0x64c] ss:$12 sps:$4 sm:$0xff]  }
  0xb7   :  { %4279 = vmatpush3.bf16.msra.mxu1 %v5023_v28  ;;  %v5096_v28 = vld [vmem:[%s6976_s1 + $0x648] ss:$12 sps:$4 sm:$0xff]  }
  0xb8   :  { %2834 = vmatpush1.bf16.msra.mxu0 %v5019_v27  ;;  %4280 = vmatprep.subr.bf16.mxu1 %v5027_v30  ;;  %v5099_v27 = vld [vmem:[%s6976_s1 + $0x710] ss:$12 sps:$4 sm:$0xff]  }
  0xb9   :  { %2835 = vmatprep.subr.bf16.mxu0 %v5026_v29  ;;  %v5100_v29 = vld [vmem:[%s6976_s1 + $0x650] ss:$12 sps:$4 sm:$0xff]  }
  0xba   :  { %v5103_v30 = vld [vmem:[%s6976_s1 + $0x664] ss:$12 sps:$4 sm:$0xff]  }
  0xbb   :  { %4281 = vmatpush3.bf16.msra.mxu1 %v5028_v32  ;;  %v5101_v32 = vld [vmem:[%s6976_s1 + $0x660] ss:$12 sps:$4 sm:$0xff]  }
  0xbc   :  { %2836 = vmatpush1.bf16.msra.mxu0 %v5024_v31  ;;  %4282 = vmatprep.subr.bf16.mxu1 %v5032_v34  ;;  %v5104_v31 = vld [vmem:[%s6976_s1 + $0x728] ss:$12 sps:$4 sm:$0xff]  }
  0xbd   :  { %2837 = vmatprep.subr.bf16.mxu0 %v5031_v33  ;;  %v5105_v33 = vld [vmem:[%s6976_s1 + $0x668] ss:$12 sps:$4 sm:$0xff]  }
  0xbe   :  { %v5108_v34 = vld [vmem:[%s6976_s1 + $0x67c] ss:$12 sps:$4 sm:$0xff]  }
  0xbf   :  { %4283 = vmatpush3.bf16.msra.mxu1 %v5033_v37  ;;  %v5110_v37 = vld [vmem:[%s6976_s1 + $0x680] ss:$12 sps:$4 sm:$0xff]  }
  0xc0   :  { %2838 = vmatpush1.bf16.msra.mxu0 %v5029_v36  ;;  %4284 = vmatprep.subr.bf16.mxu1 %v5037_v40  ;;  %v5106_v36 = vld [vmem:[%s6976_s1 + $0x678] ss:$12 sps:$4 sm:$0xff]   ;;  %v5111_v40 = vld [vmem:[%s6976_s1 + $0x690] ss:$12 sps:$4 sm:$0xff]  }
  0xc1   :  { %2839 = vmatprep.subr.bf16.mxu0 %v5036_v39  ;;  %v5114_v39 = vld [vmem:[%s6976_s1 + $0x758] ss:$12 sps:$4 sm:$0xff]  }
  0xc3   :  { %4285 = vmatpush3.bf16.msra.mxu1 %v5038_v42  ;;  %v5118_v42 = vld [vmem:[%s6976_s1 + $0x6ac] ss:$12 sps:$4 sm:$0xff]  }
  0xc4   :  { %2840 = vmatpush1.bf16.msra.mxu0 %v5034_v41  ;;  %4292 = vmatprep.subr.bf16.mxu1 %v5042_v44  ;;  %v5115_v41 = vld [vmem:[%s6976_s1 + $0x698] ss:$12 sps:$4 sm:$0xff]   ;;  %v5116_v44 = vld [vmem:[%s6976_s1 + $0x6a8] ss:$12 sps:$4 sm:$0xff]  }
  0xc5   :  { %2841 = vmatprep.subr.bf16.mxu0 %v5041_v43  ;;  %v5119_v43 = vld [vmem:[%s6976_s1 + $0x770] ss:$12 sps:$4 sm:$0xff]  }
  0xc6   :  { %3143 = vmatmul.mubr.bf16.vlgmr.msra.gmra.mrb[12].mxu1 %v5900_v12  ;;  %v5083_v12 = vld [vmem:[%s6976_s1 + $0x604] ss:$12 sps:$4 sm:$0xff]  }
  0xc7   :  { %4293 = vmatpush3.bf16.msra.mxu1 %v5043_v46  ;;  %3182 = vmatprep.mubr.bf16.mxu1 %v3830_v38  ;;  %v5113_v38 = vld [vmem:[%s6976_s1 + $0x694] ss:$12 sps:$4 sm:$0xff]   ;;  %v5123_v46 = vld [vmem:[%s6976_s1 + $0x6c4] ss:$12 sps:$4 sm:$0xff]  }
  0xc8   :  { %2842 = vmatpush1.bf16.msra.mxu0 %v5039_v45  ;;  %4294 = vmatprep.subr.bf16.mxu1 %v5047_v48  ;;  %v5120_v45 = vld [vmem:[%s6976_s1 + $0x6b0] ss:$12 sps:$4 sm:$0xff]   ;;  %v5121_v48 = vld [vmem:[%s6976_s1 + $0x6c0] ss:$12 sps:$4 sm:$0xff]  }
  0xc9   :  { %2843 = vmatprep.subr.bf16.mxu0 %v5046_v47  ;;  %v5126_v47 = vld [vmem:[%s6976_s1 + $0x848] ss:$12 sps:$4 sm:$0xff]  }
  0xcb   :  { %4295 = vmatpush3.bf16.msra.mxu1 %v5048_v50  ;;  %v6217_v50 = vld [vmem:[%s6975_s0 + $0x28] sm:$0x77] }
  0xcc   :  { %2844 = vmatpush1.bf16.msra.mxu0 %v5044_v49  ;;  %4296 = vmatprep.subr.bf16.mxu1 %v5052_v53  ;;  %v6212_v49 = vcombine.low %v6113_v17, %v6113_v17  ;;  %v5130_v53 = vld [vmem:[%s6976_s1 + $0x6dc] ss:$12 sps:$4 sm:$0xff]  }
  0xcd   :  { %2845 = vmatprep.subr.bf16.mxu0 %v5051_v51  ;;  %v5127_v51 = vld [vmem:[%s6976_s1 + $0x788] ss:$12 sps:$4 sm:$0xff]   ;;  %v5162_v17 = vld [vmem:[%s6976_s1 + $0x830] ss:$12 sps:$4 sm:$0xff]  }
  0xcf   :  { %4297 = vmatpush3.bf16.msra.mxu1 %v5053_v54  ;;  %v5128_v54 = vld [vmem:[%s6976_s1 + $0x6d8] ss:$12 sps:$4 sm:$0xff]  }
  0xd0   :  { %2846 = vmatpush1.bf16.msra.mxu0 %v5049_v52  ;;  %4298 = vmatprep.subr.bf16.mxu1 %v5057_v56  ;;  %v5131_v52 = vld [vmem:[%s6976_s1 + $0x860] ss:$12 sps:$4 sm:$0xff]  }
  0xd1   :  { %2847 = vmatprep.subr.bf16.mxu0 %v5056_v55  ;;  %v6233_v55 = vcombine.high %v6217_v50, %v6217_v50  ;;  %v5132_v56 = vld [vmem:[%s6976_s1 + $0x7a0] ss:$12 sps:$4 sm:$0xff]  }
  0xd3   :  { %4299 = vmatpush3.bf16.msra.mxu1 %v5058_v58  ;;  %v5136_v58 = vld [vmem:[%s6976_s1 + $0x878] ss:$12 sps:$4 sm:$0xff]  }
  0xd4   :  { %2848 = vmatpush1.bf16.msra.mxu0 %v5054_v57  ;;  %4300 = vmatprep.subr.bf16.mxu1 %v5062_v60  ;;  %v5135_v57 = vld [vmem:[%s6976_s1 + $0x6f4] ss:$12 sps:$4 sm:$0xff]   ;;  %v5137_v60 = vld [vmem:[%s6976_s1 + $0x7b8] ss:$12 sps:$4 sm:$0xff]  }
  0xd5   :  { %2849 = vmatprep.subr.bf16.mxu0 %v5061_v59  ;;  %v5133_v59 = vld [vmem:[%s6976_s1 + $0x6f0] ss:$12 sps:$4 sm:$0xff]  }
  0xd7   :  { %4301 = vmatpush3.bf16.msra.mxu1 %v5063_v62  ;;  %v5141_v62 = vld [vmem:[%s6976_s1 + $0x890] ss:$12 sps:$4 sm:$0xff]  }
  0xd8   :  { %2850 = vmatpush1.bf16.msra.mxu0 %v5059_v61  ;;  %4302 = vmatprep.subr.bf16.mxu1 %v5067_v0  ;;  %v5140_v61 = vld [vmem:[%s6976_s1 + $0x70c] ss:$12 sps:$4 sm:$0xff]   ;;  %v5142_v0 = vld [vmem:[%s6976_s1 + $0x7d0] ss:$12 sps:$4 sm:$0xff]  }
  0xd9   :  { %2851 = vmatprep.subr.bf16.mxu0 %v5066_v63  ;;  %v5138_v63 = vld [vmem:[%s6976_s1 + $0x708] ss:$12 sps:$4 sm:$0xff]  }
  0xdb   :  { %4303 = vmatpush3.bf16.msra.mxu1 %v5068_v2  ;;  %v5146_v2 = vld [vmem:[%s6976_s1 + $0x8a8] ss:$12 sps:$4 sm:$0xff]  }
  0xdc   :  { %2852 = vmatpush1.bf16.msra.mxu0 %v5064_v1  ;;  %4304 = vmatprep.subr.bf16.mxu1 %v5072_v4  ;;  %v5145_v1 = vld [vmem:[%s6976_s1 + $0x724] ss:$12 sps:$4 sm:$0xff]   ;;  %v5147_v4 = vld [vmem:[%s6976_s1 + $0x7e8] ss:$12 sps:$4 sm:$0xff]  }
  0xdd   :  { %2853 = vmatprep.subr.bf16.mxu0 %v5071_v3  ;;  %v5143_v3 = vld [vmem:[%s6976_s1 + $0x720] ss:$12 sps:$4 sm:$0xff]  }
  0xdf   :  { %4305 = vmatpush3.bf16.msra.mxu1 %v5073_v6  ;;  %v5151_v6 = vld [vmem:[%s6976_s1 + $0x8c0] ss:$12 sps:$4 sm:$0xff]  }
  0xe0   :  { %2854 = vmatpush1.bf16.msra.mxu0 %v5069_v5  ;;  %4306 = vmatprep.subr.bf16.mxu1 %v5077_v9  ;;  %v5150_v5 = vld [vmem:[%s6976_s1 + $0x73c] ss:$12 sps:$4 sm:$0xff]   ;;  %v5152_v9 = vld [vmem:[%s6976_s1 + $0x800] ss:$12 sps:$4 sm:$0xff]  }
  0xe1   :  { %2855 = vmatprep.subr.bf16.mxu0 %v5076_v8  ;;  %v5148_v8 = vld [vmem:[%s6976_s1 + $0x738] ss:$12 sps:$4 sm:$0xff]  }
  0xe3   :  { %4307 = vmatpush3.bf16.msra.mxu1 %v5078_v11  ;;  %v5156_v11 = vld [vmem:[%s6976_s1 + $0x8d8] ss:$12 sps:$4 sm:$0xff]  }
  0xe4   :  { %2856 = vmatpush1.bf16.msra.mxu0 %v5074_v10  ;;  %4314 = vmatprep.subr.bf16.mxu1 %v5084_v13  ;;  %v5155_v10 = vld [vmem:[%s6976_s1 + $0x754] ss:$12 sps:$4 sm:$0xff]   ;;  %v5157_v13 = vld [vmem:[%s6976_s1 + $0x818] ss:$12 sps:$4 sm:$0xff]  }
  0xe5   :  { %2866 = vmatprep.subr.bf16.mxu0 %v5083_v12  ;;  %v5153_v12 = vld [vmem:[%s6976_s1 + $0x750] ss:$12 sps:$4 sm:$0xff]  }
  0xe6   :  { %3183 = vmatmul.mubr.bf16.vlgmr.msra.gmra.mrb[16].mxu1 %v3829_v16 }
  0xe7   :  { %2858 = vmatmul.mubr.bf16.vlgmr.msra.gmra.mrb[0].mxu0 %v3829_v16  ;;  %4315 = vmatpush3.bf16.msra.mxu1 %v5085_v15  ;;  %v5161_v15 = vld [vmem:[%s6976_s1 + $0x8f0] ss:$12 sps:$4 sm:$0xff]   ;;  %v5158_v16 = vld [vmem:[%s6976_s1 + $0x768] ss:$12 sps:$4 sm:$0xff]  }
  0xe8   :  { %2867 = vmatpush1.bf16.msra.mxu0 %v5081_v14  ;;  %4316 = vmatprep.subr.bf16.mxu1 %v5089_v7  ;;  %v5160_v14 = vld [vmem:[%s6976_s1 + $0x76c] ss:$12 sps:$4 sm:$0xff]   ;;  %v5168_v7 = vld [vmem:[%s6976_s1 + $0x9c8] ss:$12 sps:$4 sm:$0xff]  }
  0xe9   :  { %2868 = vmatprep.subr.bf16.mxu0 %v5088_v18  ;;  %3222 = vmatprep.mubr.bf16.mxu1 %v3832_v19  ;;  %v5165_v18 = vld [vmem:[%s6976_s1 + $0x784] ss:$12 sps:$4 sm:$0xff]  }
  0xea   :  { %2898 = vmatprep.mubr.bf16.mxu0 %v3832_v19  ;;  %v5163_v19 = vld [vmem:[%s6976_s1 + $0x780] ss:$12 sps:$4 sm:$0xff]  }
  0xeb   :  { %4317 = vmatpush3.bf16.msra.mxu1 %v5090_v21  ;;  %v6326_v21 = vcombine.low %v6217_v50, %v6217_v50  ;;  %v5200_v50 = vld [vmem:[%s6976_s1 + $0x828] ss:$12 sps:$4 sm:$0xff]  }
  0xec   :  { %2869 = vmatpush1.bf16.msra.mxu0 %v5086_v20  ;;  %4318 = vmatprep.subr.bf16.mxu1 %v5094_v23  ;;  %v5169_v20 = vld [vmem:[%s6976_s1 + $0x908] ss:$12 sps:$4 sm:$0xff]  }
  0xed   :  { %2870 = vmatprep.subr.bf16.mxu0 %v5093_v22  ;;  %v6331_v22 = vld [vmem:[%s6975_s0 + $0x30] sm:$0x77]  ;;  %v5172_v23 = vld [vmem:[%s6976_s1 + $0x79c] ss:$12 sps:$4 sm:$0xff]  }
  0xef   :  { %4319 = vmatpush3.bf16.msra.mxu1 %v5095_v25  ;;  %v6341_v25 = vcombine.high %v6331_v22, %v6331_v22 }
  0xf0   :  { %2871 = vmatpush1.bf16.msra.mxu0 %v5091_v24  ;;  %4320 = vmatprep.subr.bf16.mxu1 %v5099_v27  ;;  %v5173_v24 = vld [vmem:[%s6976_s1 + $0x9e0] ss:$12 sps:$4 sm:$0xff]  }
  0xf1   :  { %2872 = vmatprep.subr.bf16.mxu0 %v5098_v26  ;;  %v5170_v26 = vld [vmem:[%s6976_s1 + $0x798] ss:$12 sps:$4 sm:$0xff]   ;;  %v5174_v27 = vld [vmem:[%s6976_s1 + $0x920] ss:$12 sps:$4 sm:$0xff]  }
  0xf3   :  { %4321 = vmatpush3.bf16.msra.mxu1 %v5100_v29  ;;  %v5178_v29 = vld [vmem:[%s6976_s1 + $0x9f8] ss:$12 sps:$4 sm:$0xff]  }
  0xf4   :  { %2873 = vmatpush1.bf16.msra.mxu0 %v5096_v28  ;;  %4322 = vmatprep.subr.bf16.mxu1 %v5104_v31  ;;  %v5177_v28 = vld [vmem:[%s6976_s1 + $0x7b4] ss:$12 sps:$4 sm:$0xff]   ;;  %v5179_v31 = vld [vmem:[%s6976_s1 + $0x938] ss:$12 sps:$4 sm:$0xff]  }
  0xf5   :  { %2874 = vmatprep.subr.bf16.mxu0 %v5103_v30  ;;  %v5175_v30 = vld [vmem:[%s6976_s1 + $0x7b0] ss:$12 sps:$4 sm:$0xff]  }
  0xf7   :  { %4323 = vmatpush3.bf16.msra.mxu1 %v5105_v33  ;;  %v5183_v33 = vld [vmem:[%s6976_s1 + $0xa10] ss:$12 sps:$4 sm:$0xff]  }
  0xf8   :  { %2875 = vmatpush1.bf16.msra.mxu0 %v5101_v32  ;;  %4324 = vmatprep.subr.bf16.mxu1 %v5109_v35  ;;  %v5182_v32 = vld [vmem:[%s6976_s1 + $0x7cc] ss:$12 sps:$4 sm:$0xff]   ;;  %v5184_v35 = vld [vmem:[%s6976_s1 + $0x950] ss:$12 sps:$4 sm:$0xff]  }
  0xf9   :  { %2876 = vmatprep.subr.bf16.mxu0 %v5108_v34  ;;  %v5180_v34 = vld [vmem:[%s6976_s1 + $0x7c8] ss:$12 sps:$4 sm:$0xff]  }
  0xfb   :  { %4325 = vmatpush3.bf16.msra.mxu1 %v5110_v37  ;;  %v5188_v37 = vld [vmem:[%s6976_s1 + $0xa28] ss:$12 sps:$4 sm:$0xff]  }
  0xfc   :  { %2877 = vmatpush1.bf16.msra.mxu0 %v5106_v36  ;;  %4326 = vmatprep.subr.bf16.mxu1 %v5114_v39  ;;  %v5187_v36 = vld [vmem:[%s6976_s1 + $0x7e4] ss:$12 sps:$4 sm:$0xff]   ;;  %v5189_v39 = vld [vmem:[%s6976_s1 + $0x968] ss:$12 sps:$4 sm:$0xff]  }
  0xfd   :  { %2878 = vmatprep.subr.bf16.mxu0 %v5113_v38  ;;  %v5185_v38 = vld [vmem:[%s6976_s1 + $0x7e0] ss:$12 sps:$4 sm:$0xff]  }
  0xff   :  { %4327 = vmatpush3.bf16.msra.mxu1 %v5115_v41  ;;  %v5193_v41 = vld [vmem:[%s6976_s1 + $0xa40] ss:$12 sps:$4 sm:$0xff]  }
 0x100   :  { %2879 = vmatpush1.bf16.msra.mxu0 %v5111_v40  ;;  %4328 = vmatprep.subr.bf16.mxu1 %v5119_v43  ;;  %v5192_v40 = vld [vmem:[%s6976_s1 + $0x7fc] ss:$12 sps:$4 sm:$0xff]   ;;  %v5194_v43 = vld [vmem:[%s6976_s1 + $0x980] ss:$12 sps:$4 sm:$0xff]  }
 0x101   :  { %2880 = vmatprep.subr.bf16.mxu0 %v5118_v42  ;;  %v5190_v42 = vld [vmem:[%s6976_s1 + $0x7f8] ss:$12 sps:$4 sm:$0xff]  }
 0x103   :  { %4329 = vmatpush3.bf16.msra.mxu1 %v5120_v45  ;;  %v5198_v45 = vld [vmem:[%s6976_s1 + $0xa58] ss:$12 sps:$4 sm:$0xff]  }
 0x104   :  { %2881 = vmatpush1.bf16.msra.mxu0 %v5116_v44  ;;  %4336 = vmatprep.subr.bf16.mxu1 %v5126_v47  ;;  %v5197_v44 = vld [vmem:[%s6976_s1 + $0x814] ss:$12 sps:$4 sm:$0xff]   ;;  %v5199_v47 = vld [vmem:[%s6976_s1 + $0x998] ss:$12 sps:$4 sm:$0xff]  }
 0x105   :  { %2882 = vmatprep.subr.bf16.mxu0 %v5123_v46  ;;  %v5195_v46 = vld [vmem:[%s6976_s1 + $0x810] ss:$12 sps:$4 sm:$0xff]  }
 0x106   :  { %3223 = vmatmul.mubr.bf16.vlgmr.msra.gmra.mrb[20].mxu1 %v6212_v49 }
 0x107   :  { %4337 = vmatpush3.bf16.msra.mxu1 %v5127_v51  ;;  %3262 = vmatprep.mubr.bf16.mxu1 %v6233_v55  ;;  %v5204_v51 = vld [vmem:[%s6976_s1 + $0x9b0] ss:$12 sps:$4 sm:$0xff]  }
 0x108   :  { %2883 = vmatpush1.bf16.msra.mxu0 %v5121_v48  ;;  %4338 = vmatprep.subr.bf16.mxu1 %v5131_v52  ;;  %v5202_v48 = vld [vmem:[%s6976_s1 + $0x82c] ss:$12 sps:$4 sm:$0xff]   ;;  %v5210_v52 = vld [vmem:[%s6976_s1 + $0xb48] ss:$12 sps:$4 sm:$0xff]  }
 0x109   :  { %2884 = vmatprep.subr.bf16.mxu0 %v5130_v53  ;;  %v5207_v53 = vld [vmem:[%s6976_s1 + $0x844] ss:$12 sps:$4 sm:$0xff]  }
 0x10b   :  { %4339 = vmatpush3.bf16.msra.mxu1 %v5132_v56  ;;  %v5211_v56 = vld [vmem:[%s6976_s1 + $0xa88] ss:$12 sps:$4 sm:$0xff]  }
 0x10c   :  { %2885 = vmatpush1.bf16.msra.mxu0 %v5128_v54  ;;  %4340 = vmatprep.subr.bf16.mxu1 %v5136_v58  ;;  %v5205_v54 = vld [vmem:[%s6976_s1 + $0x840] ss:$12 sps:$4 sm:$0xff]   ;;  %v5214_v58 = vld [vmem:[%s6976_s1 + $0x85c] ss:$12 sps:$4 sm:$0xff]  }
 0x10d   :  { %2886 = vmatprep.subr.bf16.mxu0 %v5135_v57  ;;  %v6444_v57 = vld [vmem:[%s6975_s0 + $0x38] sm:$0x77] }
 0x10f   :  { %4341 = vmatpush3.bf16.msra.mxu1 %v5137_v60  ;;  %v6454_v60 = vcombine.high %v6444_v57, %v6444_v57 }
 0x110   :  { %2887 = vmatpush1.bf16.msra.mxu0 %v5133_v59  ;;  %4342 = vmatprep.subr.bf16.mxu1 %v5141_v62  ;;  %v5215_v59 = vld [vmem:[%s6976_s1 + $0xb60] ss:$12 sps:$4 sm:$0xff]  }
 0x111   :  { %2888 = vmatprep.subr.bf16.mxu0 %v5140_v61  ;;  %v5212_v61 = vld [vmem:[%s6976_s1 + $0x858] ss:$12 sps:$4 sm:$0xff]   ;;  %v5216_v62 = vld [vmem:[%s6976_s1 + $0xaa0] ss:$12 sps:$4 sm:$0xff]  }
 0x113   :  { %4343 = vmatpush3.bf16.msra.mxu1 %v5142_v0  ;;  %v5220_v0 = vld [vmem:[%s6976_s1 + $0xb78] ss:$12 sps:$4 sm:$0xff]  }
 0x114   :  { %2889 = vmatpush1.bf16.msra.mxu0 %v5138_v63  ;;  %4344 = vmatprep.subr.bf16.mxu1 %v5146_v2  ;;  %v5219_v63 = vld [vmem:[%s6976_s1 + $0x874] ss:$12 sps:$4 sm:$0xff]   ;;  %v5221_v2 = vld [vmem:[%s6976_s1 + $0xab8] ss:$12 sps:$4 sm:$0xff]  }
 0x115   :  { %2890 = vmatprep.subr.bf16.mxu0 %v5145_v1  ;;  %v5217_v1 = vld [vmem:[%s6976_s1 + $0x870] ss:$12 sps:$4 sm:$0xff]  }
 0x117   :  { %4345 = vmatpush3.bf16.msra.mxu1 %v5147_v4  ;;  %v5225_v4 = vld [vmem:[%s6976_s1 + $0xb90] ss:$12 sps:$4 sm:$0xff]  }
 0x118   :  { %2891 = vmatpush1.bf16.msra.mxu0 %v5143_v3  ;;  %4346 = vmatprep.subr.bf16.mxu1 %v5151_v6  ;;  %v5224_v3 = vld [vmem:[%s6976_s1 + $0x88c] ss:$12 sps:$4 sm:$0xff]   ;;  %v5226_v6 = vld [vmem:[%s6976_s1 + $0xad0] ss:$12 sps:$4 sm:$0xff]  }
 0x119   :  { %2892 = vmatprep.subr.bf16.mxu0 %v5150_v5  ;;  %v5222_v5 = vld [vmem:[%s6976_s1 + $0x888] ss:$12 sps:$4 sm:$0xff]  }
 0x11b   :  { %4347 = vmatpush3.bf16.msra.mxu1 %v5152_v9  ;;  %v5230_v9 = vld [vmem:[%s6976_s1 + $0xba8] ss:$12 sps:$4 sm:$0xff]  }
 0x11c   :  { %2893 = vmatpush1.bf16.msra.mxu0 %v5148_v8  ;;  %4348 = vmatprep.subr.bf16.mxu1 %v5156_v11  ;;  %v5229_v8 = vld [vmem:[%s6976_s1 + $0x8a4] ss:$12 sps:$4 sm:$0xff]   ;;  %v5231_v11 = vld [vmem:[%s6976_s1 + $0xae8] ss:$12 sps:$4 sm:$0xff]  }
 0x11d   :  { %2894 = vmatprep.subr.bf16.mxu0 %v5155_v10  ;;  %v5227_v10 = vld [vmem:[%s6976_s1 + $0x8a0] ss:$12 sps:$4 sm:$0xff]  }
 0x11f   :  { %4349 = vmatpush3.bf16.msra.mxu1 %v5157_v13  ;;  %v5235_v13 = vld [vmem:[%s6976_s1 + $0xbc0] ss:$12 sps:$4 sm:$0xff]  }
 0x120   :  { %2895 = vmatpush1.bf16.msra.mxu0 %v5153_v12  ;;  %4350 = vmatprep.subr.bf16.mxu1 %v5161_v15  ;;  %v5234_v12 = vld [vmem:[%s6976_s1 + $0x8bc] ss:$12 sps:$4 sm:$0xff]   ;;  %v5236_v15 = vld [vmem:[%s6976_s1 + $0xb00] ss:$12 sps:$4 sm:$0xff]  }
 0x121   :  { %2896 = vmatprep.subr.bf16.mxu0 %v5160_v14  ;;  %v5232_v14 = vld [vmem:[%s6976_s1 + $0x8b8] ss:$12 sps:$4 sm:$0xff]  }
 0x123   :  { %4351 = vmatpush3.bf16.msra.mxu1 %v5162_v17  ;;  %v5240_v17 = vld [vmem:[%s6976_s1 + $0xbd8] ss:$12 sps:$4 sm:$0xff]  }
 0x124   :  { %2897 = vmatpush1.bf16.msra.mxu0 %v5158_v16  ;;  %4358 = vmatprep.subr.bf16.mxu1 %v5168_v7  ;;  %v5239_v16 = vld [vmem:[%s6976_s1 + $0x8d4] ss:$12 sps:$4 sm:$0xff]   ;;  %v5241_v7 = vld [vmem:[%s6976_s1 + $0xb18] ss:$12 sps:$4 sm:$0xff]  }
 0x125   :  { %2907 = vmatprep.subr.bf16.mxu0 %v5165_v18  ;;  %v5237_v18 = vld [vmem:[%s6976_s1 + $0x8d0] ss:$12 sps:$4 sm:$0xff]  }
 0x126   :  { %3263 = vmatmul.mubr.bf16.vlgmr.msra.gmra.mrb[24].mxu1 %v6326_v21 }
 0x127   :  { %2899 = vmatmul.mubr.bf16.vlgmr.msra.gmra.mrb[0].mxu0 %v6212_v49  ;;  %4359 = vmatpush3.bf16.msra.mxu1 %v5169_v20  ;;  %v5203_v49 = vld [vmem:[%s6976_s1 + $0xa70] ss:$12 sps:$4 sm:$0xff]  }
 0x128   :  { %2908 = vmatpush1.bf16.msra.mxu0 %v5163_v19  ;;  %4360 = vmatprep.subr.bf16.mxu1 %v5173_v24  ;;  %v5244_v19 = vld [vmem:[%s6976_s1 + $0x8ec] ss:$12 sps:$4 sm:$0xff]   ;;  %v5245_v20 = vld [vmem:[%s6976_s1 + $0xbf0] ss:$12 sps:$4 sm:$0xff]  }
 0x129   :  { %2909 = vmatprep.subr.bf16.mxu0 %v5172_v23  ;;  %3302 = vmatprep.mubr.bf16.mxu1 %v6341_v25  ;;  %v5246_v23 = vld [vmem:[%s6976_s1 + $0xb30] ss:$12 sps:$4 sm:$0xff]  }
 0x12a   :  { %2939 = vmatprep.mubr.bf16.mxu0 %v6233_v55  ;;  %v6436_v55 = vcombine.low %v6331_v22, %v6331_v22  ;;  %v5242_v22 = vld [vmem:[%s6976_s1 + $0x8e8] ss:$12 sps:$4 sm:$0xff]   ;;  %v5251_v24 = vld [vmem:[%s6976_s1 + $0x904] ss:$12 sps:$4 sm:$0xff]  }
 0x12b   :  { %4361 = vmatpush3.bf16.msra.mxu1 %v5174_v27  ;;  %v5249_v27 = vld [vmem:[%s6976_s1 + $0x900] ss:$12 sps:$4 sm:$0xff]  }
 0x12c   :  { %2910 = vmatpush1.bf16.msra.mxu0 %v5170_v26  ;;  %4362 = vmatprep.subr.bf16.mxu1 %v5178_v29  ;;  %v6541_v26 = vcombine.low %v6444_v57, %v6444_v57 }
 0x12d   :  { %2911 = vmatprep.subr.bf16.mxu0 %v5177_v28  ;;  %v5254_v28 = vld [vmem:[%s6976_s1 + $0x91c] ss:$12 sps:$4 sm:$0xff]  }
 0x12f   :  { %4363 = vmatpush3.bf16.msra.mxu1 %v5179_v31 }
 0x130   :  { %2912 = vmatpush1.bf16.msra.mxu0 %v5175_v30  ;;  %4364 = vmatprep.subr.bf16.mxu1 %v5183_v33  ;;  %v5252_v30 = vld [vmem:[%s6976_s1 + $0x918] ss:$12 sps:$4 sm:$0xff]  }
 0x131   :  { %2913 = vmatprep.subr.bf16.mxu0 %v5182_v32  ;;  %v5257_v32 = vld [vmem:[%s6976_s1 + $0x934] ss:$12 sps:$4 sm:$0xff]  }
 0x133   :  { %4365 = vmatpush3.bf16.msra.mxu1 %v5184_v35 }
 0x134   :  { %2914 = vmatpush1.bf16.msra.mxu0 %v5180_v34  ;;  %4366 = vmatprep.subr.bf16.mxu1 %v5188_v37 }
 0x135   :  { %2915 = vmatprep.subr.bf16.mxu0 %v5187_v36  ;;  %v583_v36 = vlaneseq }
 0x137   :  { %4367 = vmatpush3.bf16.msra.mxu1 %v5189_v39 }
 0x138   :  { %2916 = vmatpush1.bf16.msra.mxu0 %v5185_v38  ;;  %4368 = vmatprep.subr.bf16.mxu1 %v5193_v41  ;;  %v5258_v41 = vld [vmem:[%s6976_s1 + $0x948] ss:$12 sps:$4 sm:$0xff]  }
 0x139   :  { %2917 = vmatprep.subr.bf16.mxu0 %v5192_v40  ;;  %v6551_v29 = vpop.f32.mrb[0].mxu1 }
 0x13a   :  { %v6557_v31 = vpop.f32.mrb[1].mxu1 }
 0x13b   :  { %4369 = vmatpush3.bf16.msra.mxu1 %v5194_v43  ;;  %v2740_v33 = vpop.f32.mrb[2].mxu1  ;;  %v5263_v43 = vld [vmem:[%s6976_s1 + $0x964] ss:$12 sps:$4 sm:$0xff]  }
 0x13c   :  { %2918 = vmatpush1.bf16.msra.mxu0 %v5190_v42  ;;  %4370 = vmatprep.subr.bf16.mxu1 %v5198_v45  ;;  %v2741_v34 = vpop.f32.mrb[3].mxu1  ;;  %v6571_v42 = vshrl.u32 %v583_v36, 7  ;;  %v5261_v45 = vld [vmem:[%s6976_s1 + $0x960] ss:$12 sps:$4 sm:$0xff]  }
 0x13d   :  { %2919 = vmatprep.subr.bf16.mxu0 %v5197_v44  ;;  %v5309_v33 = vld [vmem:[%s6976_s1 + $0xae0] ss:$12 sps:$4 sm:$0xff]   ;;  %v5314_v34 = vld [vmem:[%s6976_s1 + $0xafc] ss:$12 sps:$4 sm:$0xff]  }
 0x13e   :  { %v593_v44 = vsub.s32 2, %v6571_v42 }
 0x13f   :  { %4371 = vmatpush3.bf16.msra.mxu1 %v5199_v47  ;;  %v6586_v47 = vld [vmem:[%s6977_s2] sm:$0x7] }
 0x140   :  { %2920 = vmatpush1.bf16.msra.mxu0 %v5195_v46  ;;  %4372 = vmatprep.subr.bf16.mxu1 %v5203_v49  ;;  %v5266_v46 = vld [vmem:[%s6976_s1 + $0x97c] ss:$12 sps:$4 sm:$0xff]   ;;  %v5264_v49 = vld [vmem:[%s6976_s1 + $0x978] ss:$12 sps:$4 sm:$0xff]  }
 0x141   :  { %2921 = vmatprep.subr.bf16.mxu0 %v5202_v48  ;;  %v594_v48 = vrot.slane %v6586_v47, %v593_v44  ;;  %v5318_v44 = vld [vmem:[%s6976_s1 + $0xb28] ss:$12 sps:$4 sm:$0xff]  }
 0x143   :  { %4373 = vmatpush3.bf16.msra.mxu1 %v5204_v51 }
 0x144   :  { %2922 = vmatpush1.bf16.msra.mxu0 %v5200_v50  ;;  %4380 = vmatprep.subr.bf16.mxu1 %v5210_v52  ;;  %v5269_v50 = vld [vmem:[%s6976_s1 + $0x994] ss:$12 sps:$4 sm:$0xff]  }
 0x145   :  { %2923 = vmatprep.subr.bf16.mxu0 %v5207_v53 }
 0x146   :  { %3303 = vmatmul.mubr.bf16.vlgmr.msra.gmra.mrb[28].mxu1 %v6436_v55 }
 0x147   :  { %4381 = vmatpush3.bf16.msra.mxu1 %v5211_v56  ;;  %3342 = vmatprep.mubr.bf16.mxu1 %v6454_v60 }
 0x148   :  { %2924 = vmatpush1.bf16.msra.mxu0 %v5205_v54  ;;  %4382 = vmatprep.subr.bf16.mxu1 %v5215_v59  ;;  %v5267_v54 = vld [vmem:[%s6976_s1 + $0x990] ss:$12 sps:$4 sm:$0xff]  }
 0x149   :  { %2925 = vmatprep.subr.bf16.mxu0 %v5214_v58  ;;  %v5272_v58 = vld [vmem:[%s6976_s1 + $0x9ac] ss:$12 sps:$4 sm:$0xff]  }
 0x14b   :  { %4383 = vmatpush3.bf16.msra.mxu1 %v5216_v62  ;;  %v5270_v62 = vld [vmem:[%s6976_s1 + $0x9a8] ss:$12 sps:$4 sm:$0xff]  }
 0x14c   :  { %2926 = vmatpush1.bf16.msra.mxu0 %v5212_v61  ;;  %4384 = vmatprep.subr.bf16.mxu1 %v5220_v0  ;;  %v5273_v0 = vld [vmem:[%s6976_s1 + $0x9c0] ss:$12 sps:$4 sm:$0xff]  }
 0x14d   :  { %2927 = vmatprep.subr.bf16.mxu0 %v5219_v63  ;;  %v5275_v63 = vld [vmem:[%s6976_s1 + $0x9c4] ss:$12 sps:$4 sm:$0xff]  }
 0x14f   :  { %4385 = vmatpush3.bf16.msra.mxu1 %v5221_v2  ;;  %v5276_v2 = vld [vmem:[%s6976_s1 + $0x9d8] ss:$12 sps:$4 sm:$0xff]  }
 0x150   :  { %2928 = vmatpush1.bf16.msra.mxu0 %v5217_v1  ;;  %4386 = vmatprep.subr.bf16.mxu1 %v5225_v4  ;;  %v5278_v1 = vld [vmem:[%s6976_s1 + $0x9dc] ss:$12 sps:$4 sm:$0xff]  }
 0x151   :  { %2929 = vmatprep.subr.bf16.mxu0 %v5224_v3  ;;  %v5281_v3 = vld [vmem:[%s6976_s1 + $0x9f4] ss:$12 sps:$4 sm:$0xff]   ;;  %v5279_v4 = vld [vmem:[%s6976_s1 + $0x9f0] ss:$12 sps:$4 sm:$0xff]  }
 0x153   :  { %4387 = vmatpush3.bf16.msra.mxu1 %v5226_v6  ;;  %v5282_v6 = vld [vmem:[%s6976_s1 + $0xa08] ss:$12 sps:$4 sm:$0xff]  }
 0x154   :  { %2930 = vmatpush1.bf16.msra.mxu0 %v5222_v5  ;;  %4388 = vmatprep.subr.bf16.mxu1 %v5230_v9  ;;  %v5284_v5 = vld [vmem:[%s6976_s1 + $0xa0c] ss:$12 sps:$4 sm:$0xff]  }
 0x155   :  { %2931 = vmatprep.subr.bf16.mxu0 %v5229_v8  ;;  %v5287_v8 = vld [vmem:[%s6976_s1 + $0xa24] ss:$12 sps:$4 sm:$0xff]   ;;  %v5285_v9 = vld [vmem:[%s6976_s1 + $0xa20] ss:$12 sps:$4 sm:$0xff]  }
 0x157   :  { %4389 = vmatpush3.bf16.msra.mxu1 %v5231_v11  ;;  %v5288_v11 = vld [vmem:[%s6976_s1 + $0xa38] ss:$12 sps:$4 sm:$0xff]  }
 0x158   :  { %2932 = vmatpush1.bf16.msra.mxu0 %v5227_v10  ;;  %4390 = vmatprep.subr.bf16.mxu1 %v5235_v13  ;;  %v5290_v10 = vld [vmem:[%s6976_s1 + $0xa3c] ss:$12 sps:$4 sm:$0xff]  }
 0x159   :  { %2933 = vmatprep.subr.bf16.mxu0 %v5234_v12  ;;  %v4242_v35 = vpop.f32.mrb[4].mxu1  ;;  %v5293_v12 = vld [vmem:[%s6976_s1 + $0xa54] ss:$12 sps:$4 sm:$0xff]  }
 0x15a   :  { %v4243_v37 = vpop.f32.mrb[5].mxu1 }
 0x15b   :  { %4391 = vmatpush3.bf16.msra.mxu1 %v5236_v15  ;;  %v4244_v38 = vadd.f32 %v4243_v37, %v4242_v35  ;;  %v4245_v39 = vpop.f32.mrb[6].mxu1  ;;  %v5291_v15 = vld [vmem:[%s6976_s1 + $0xa50] ss:$12 sps:$4 sm:$0xff]   ;;  %v5312_v35 = vld [vmem:[%s6976_s1 + $0xaf8] ss:$12 sps:$4 sm:$0xff]  }
 0x15c   :  { %2934 = vmatpush1.bf16.msra.mxu0 %v5232_v14  ;;  %4392 = vmatprep.subr.bf16.mxu1 %v5240_v17  ;;  %v4246_v40 = vpop.f32.mrb[7].mxu1 }
 0x15d   :  { %2935 = vmatprep.subr.bf16.mxu0 %v5239_v16  ;;  %v3065_v51 = vadd.f32 %v4244_v38, %v594_v48  ;;  %v5320_v40 = vld [vmem:[%s6976_s1 + $0xb2c] ss:$12 sps:$4 sm:$0xff]  }
 0x15e   :  { %v3370_v48 = vld [vmem:[%s6978_s3 + $0x88] sm:$0xff] }
 0x15f   :  { %4393 = vmatpush3.bf16.msra.mxu1 %v5241_v7 }
 0x160   :  { %2936 = vmatpush1.bf16.msra.mxu0 %v5237_v18  ;;  %4394 = vmatprep.subr.bf16.mxu1 %v5245_v20  ;;  %v5296_v18 = vld [vmem:[%s6976_s1 + $0xa6c] ss:$12 sps:$4 sm:$0xff]   ;;  %v5294_v20 = vld [vmem:[%s6976_s1 + $0xa68] ss:$12 sps:$4 sm:$0xff]  }
 0x161   :  { %2937 = vmatprep.subr.bf16.mxu0 %v5244_v19 }
 0x163   :  { %4395 = vmatpush3.bf16.msra.mxu1 %v5246_v23  ;;  %v5297_v23 = vld [vmem:[%s6976_s1 + $0xa80] ss:$12 sps:$4 sm:$0xff]  }
 0x164   :  { %2938 = vmatpush1.bf16.msra.mxu0 %v5242_v22  ;;  %v5299_v22 = vld [vmem:[%s6976_s1 + $0xa84] ss:$12 sps:$4 sm:$0xff]  }
 0x165   :  { %2948 = vmatprep.subr.bf16.mxu0 %v5251_v24  ;;  %v5302_v24 = vld [vmem:[%s6976_s1 + $0xa9c] ss:$12 sps:$4 sm:$0xff]  }
 0x166   :  { %3343 = vmatmul.mubr.bf16.vlgmr.msra.gmra.mrb[32].mxu1 %v6541_v26 }
 0x167   :  { %2940 = vmatmul.mubr.bf16.vlgmr.msra.gmra.mrb[0].mxu0 %v6326_v21  ;;  %v5255_v21 = vld [vmem:[%s6976_s1 + $0x930] ss:$12 sps:$4 sm:$0xff]  }
 0x168   :  { %2949 = vmatpush1.bf16.msra.mxu0 %v5249_v27  ;;  %2980 = vmatprep.mubr.bf16.mxu0 %v6341_v25  ;;  %v5260_v25 = vld [vmem:[%s6976_s1 + $0x94c] ss:$12 sps:$4 sm:$0xff]  }
 0x169   :  { %2950 = vmatprep.subr.bf16.mxu0 %v5254_v28  ;;  %v5300_v27 = vld [vmem:[%s6976_s1 + $0xa98] ss:$12 sps:$4 sm:$0xff]   ;;  %v5305_v28 = vld [vmem:[%s6976_s1 + $0xab4] ss:$12 sps:$4 sm:$0xff]  }
 0x16c   :  { %2951 = vmatpush1.bf16.msra.mxu0 %v5252_v30  ;;  %v5303_v30 = vld [vmem:[%s6976_s1 + $0xab0] ss:$12 sps:$4 sm:$0xff]  }
 0x16d   :  { %2952 = vmatprep.subr.bf16.mxu0 %v5257_v32  ;;  %v5311_v32 = vld [vmem:[%s6976_s1 + $0xae4] ss:$12 sps:$4 sm:$0xff]  }
 0x170   :  { %2953 = vmatpush1.bf16.msra.mxu0 %v5255_v21  ;;  %v5317_v21 = vld [vmem:[%s6976_s1 + $0xb14] ss:$12 sps:$4 sm:$0xff]  }
 0x171   :  { %2954 = vmatprep.subr.bf16.mxu0 %v5260_v25  ;;  %v5315_v25 = vld [vmem:[%s6976_s1 + $0xb10] ss:$12 sps:$4 sm:$0xff]  }
 0x174   :  { %2955 = vmatpush1.bf16.msra.mxu0 %v5258_v41 }
 0x175   :  { %2956 = vmatprep.subr.bf16.mxu0 %v5263_v43 }
 0x178   :  { %2957 = vmatpush1.bf16.msra.mxu0 %v5261_v45  ;;  %v5323_v45 = vld [vmem:[%s6976_s1 + $0xb44] ss:$12 sps:$4 sm:$0xff]  }
 0x179   :  { %2958 = vmatprep.subr.bf16.mxu0 %v5266_v46  ;;  %v4264_v53 = vpop.f32.mrb[8].mxu1  ;;  %v3369_v46 = vld [vmem:[%s6978_s3 + $0x80] sm:$0xff] }
 0x17a   :  { %v4265_v52 = vpop.f32.mrb[9].mxu1 }
 0x17b   :  { %v4266_v56 = vadd.f32 %v4265_v52, %v4264_v53  ;;  %v4267_v57 = vpop.f32.mrb[10].mxu1  ;;  %v3372_v53 = vld [vmem:[%s6978_s3 + $0x98] sm:$0xff]  ;;  %v5321_v52 = vld [vmem:[%s6976_s1 + $0xb40] ss:$12 sps:$4 sm:$0xff]  }
 0x17c   :  { %2959 = vmatpush1.bf16.msra.mxu0 %v5264_v49  ;;  %v4268_v59 = vpop.f32.mrb[11].mxu1  ;;  %v3371_v49 = vld [vmem:[%s6978_s3 + $0x90] sm:$0xff]  ;;  %v3373_v57 = vld [vmem:[%s6978_s3 + $0xa0] sm:$0xff] }
 0x17d   :  { %2960 = vmatprep.subr.bf16.mxu0 %v5269_v50  ;;  %v3105_v61 = vadd.f32 %v4266_v56, %v3065_v51  ;;  %v5397_v50 = vmov 0.0|0.0   ;;  %v4663_v51 = vpack.c.bf16 %v3370_v48, %v3369_v46  ;;  %v4666_v56 = vpack.c.bf16 %v3372_v53, %v3371_v49  ;;  %v5324_v59 = vld [vmem:[%s6976_s1 + $0xb58] ss:$12 sps:$4 sm:$0xff]  }
 0x17e   :  { %4662 = vmatprep.subr.bf16.mxu1 %v5397_v50  ;;  %v5399_v53 = vmov 0.0  }
 0x17f   :  { %4664 = vmatpush3.bf16.msra.mxu1 %v4663_v51  ;;  %4519 = vmatprep.mubr.msk.f32.mxu1 %vm5398_vm0, %v5399_v53 }
 0x180   :  { %2961 = vmatpush1.bf16.msra.mxu0 %v5267_v54  ;;  %v5326_v54 = vld [vmem:[%s6976_s1 + $0xb5c] ss:$12 sps:$4 sm:$0xff]   ;;  %4665 = vmatprep.subr.bf16.mxu1 %v5397_v50 }
 0x181   :  { %2962 = vmatprep.subr.bf16.mxu0 %v5272_v58  ;;  %v3374_v58 = vld [vmem:[%s6978_s3 + $0xa8] sm:$0xff] }
 0x183   :  { %4667 = vmatpush3.bf16.msra.mxu1 %v4666_v56 }
 0x184   :  { %2963 = vmatpush1.bf16.msra.mxu0 %v5270_v62  ;;  %v4669_v62 = vpack.c.bf16 %v3374_v58, %v3373_v57  ;;  %4668 = vmatprep.subr.bf16.mxu1 %v5397_v50 }
 0x185   :  { %2964 = vmatprep.subr.bf16.mxu0 %v5275_v63  ;;  %v3375_v63 = vld [vmem:[%s6978_s3 + $0xb0] sm:$0xff] }
 0x187   :  { %4670 = vmatpush3.bf16.msra.mxu1 %v4669_v62 }
 0x188   :  { %2965 = vmatpush1.bf16.msra.mxu0 %v5273_v0  ;;  %v3376_v0 = vld [vmem:[%s6978_s3 + $0xb8] sm:$0xff]  ;;  %4671 = vmatprep.subr.bf16.mxu1 %v5397_v50 }
 0x189   :  { %2966 = vmatprep.subr.bf16.mxu0 %v5278_v1  ;;  %v5327_v1 = vld [vmem:[%s6976_s1 + $0xb70] ss:$12 sps:$4 sm:$0xff]  }
 0x18c   :  { %2967 = vmatpush1.bf16.msra.mxu0 %v5276_v2  ;;  %v5332_v2 = vld [vmem:[%s6976_s1 + $0xb8c] ss:$12 sps:$4 sm:$0xff]  }
 0x18d   :  { %2968 = vmatprep.subr.bf16.mxu0 %v5281_v3  ;;  %v4672_v3 = vpack.c.bf16 %v3376_v0, %v3375_v63 }
 0x18f   :  { %4673 = vmatpush3.bf16.msra.mxu1 %v4672_v3 }
 0x190   :  { %2969 = vmatpush1.bf16.msra.mxu0 %v5279_v4  ;;  %v3377_v4 = vld [vmem:[%s6978_s3 + $0xc0] sm:$0xff]  ;;  %4674 = vmatprep.subr.bf16.mxu1 %v5397_v50 }
 0x191   :  { %2970 = vmatprep.subr.bf16.mxu0 %v5284_v5  ;;  %v3378_v5 = vld [vmem:[%s6978_s3 + $0xc8] sm:$0xff] }
 0x194   :  { %2971 = vmatpush1.bf16.msra.mxu0 %v5282_v6  ;;  %v5330_v6 = vld [vmem:[%s6976_s1 + $0xb88] ss:$12 sps:$4 sm:$0xff]  }
 0x195   :  { %2972 = vmatprep.subr.bf16.mxu0 %v5287_v8  ;;  %v5335_v8 = vld [vmem:[%s6976_s1 + $0xba4] ss:$12 sps:$4 sm:$0xff]  }
 0x198   :  { %2973 = vmatpush1.bf16.msra.mxu0 %v5285_v9  ;;  %v4675_v9 = vpack.c.bf16 %v3378_v5, %v3377_v4 }
 0x199   :  { %2974 = vmatprep.subr.bf16.mxu0 %v5290_v10  ;;  %v4286_v13 = vpop.f32.mrb[12].mxu1  ;;  %v3379_v10 = vld [vmem:[%s6978_s3 + $0xd0] sm:$0xff] }
 0x19a   :  { %v4287_v14 = vpop.f32.mrb[13].mxu1  ;;  %4676 = vmatpush3.bf16.msra.mxu1 %v4675_v9  ;;  %v3358_v9 = vld [vmem:[%s6978_s3 + $0x28] sm:$0xff] }
 0x19b   :  { %v4288_v16 = vadd.f32 %v4287_v14, %v4286_v13  ;;  %v4289_v17 = vpop.f32.mrb[14].mxu1  ;;  %v5338_v13 = vld [vmem:[%s6976_s1 + $0xbbc] ss:$12 sps:$4 sm:$0xff]   ;;  %4677 = vmatprep.subr.bf16.mxu1 %v5397_v50 }
 0x19c   :  { %2975 = vmatpush1.bf16.msra.mxu0 %v5288_v11  ;;  %v4290_v7 = vpop.f32.mrb[15].mxu1  ;;  %v3380_v11 = vld [vmem:[%s6978_s3 + $0xd8] sm:$0xff] }
 0x19d   :  { %2976 = vmatprep.subr.bf16.mxu0 %v5293_v12  ;;  %v3145_v19 = vadd.f32 %v4288_v16, %v3105_v61  ;;  %v5329_v61 = vld [vmem:[%s6976_s1 + $0xb74] ss:$12 sps:$4 sm:$0xff]   ;;  %v4678_v14 = vpack.c.bf16 %v3380_v11, %v3379_v10  ;;  %v5339_v7 = vld [vmem:[%s6976_s1 + $0xbd0] ss:$12 sps:$4 sm:$0xff]  }
 0x19e   :  { %v5333_v12 = vld [vmem:[%s6976_s1 + $0xba0] ss:$12 sps:$4 sm:$0xff]   ;;  %v3359_v11 = vld [vmem:[%s6978_s3 + $0x30] sm:$0xff] }
 0x19f   :  { %v5341_v16 = vld [vmem:[%s6976_s1 + $0xbd4] ss:$12 sps:$4 sm:$0xff]   ;;  %4679 = vmatpush3.bf16.msra.mxu1 %v4678_v14 }
 0x1a0   :  { %2977 = vmatpush1.bf16.msra.mxu0 %v5291_v15  ;;  %v5336_v15 = vld [vmem:[%s6976_s1 + $0xbb8] ss:$12 sps:$4 sm:$0xff]   ;;  %4680 = vmatprep.subr.bf16.mxu1 %v5397_v50 }
 0x1a1   :  { %2978 = vmatprep.subr.bf16.mxu0 %v5296_v18  ;;  %v3361_v14 = vld [vmem:[%s6978_s3 + $0x40] sm:$0xff] }
 0x1a4   :  { %2979 = vmatpush1.bf16.msra.mxu0 %v5294_v20 }
 0x1a5   :  { %2989 = vmatprep.subr.bf16.mxu0 %v5299_v22  ;;  %v5344_v22 = vld [vmem:[%s6976_s1 + $0xbec] ss:$12 sps:$4 sm:$0xff]  }
 0x1a7   :  { %2981 = vmatmul.mubr.bf16.vlgmr.msra.gmra.mrb[0].mxu0 %v6436_v55  ;;  %v5308_v55 = vld [vmem:[%s6976_s1 + $0xacc] ss:$12 sps:$4 sm:$0xff]  }
 0x1a8   :  { %2990 = vmatpush1.bf16.msra.mxu0 %v5297_v23  ;;  %3021 = vmatprep.mubr.bf16.mxu0 %v6454_v60  ;;  %v5306_v60 = vld [vmem:[%s6976_s1 + $0xac8] ss:$12 sps:$4 sm:$0xff]  }
 0x1a9   :  { %2991 = vmatprep.subr.bf16.mxu0 %v5302_v24 }
 0x1ac   :  { %2992 = vmatpush1.bf16.msra.mxu0 %v5300_v27  ;;  %v5342_v27 = vld [vmem:[%s6976_s1 + $0xbe8] ss:$12 sps:$4 sm:$0xff]  }
 0x1ad   :  { %2993 = vmatprep.subr.bf16.mxu0 %v5305_v28 }
 0x1b0   :  { %2994 = vmatpush1.bf16.msra.mxu0 %v5303_v30 }
 0x1b1   :  { %2995 = vmatprep.subr.bf16.mxu0 %v5308_v55 }
 0x1b4   :  { %2996 = vmatpush1.bf16.msra.mxu0 %v5306_v60 }
 0x1b5   :  { %2997 = vmatprep.subr.bf16.mxu0 %v5311_v32 }
 0x1b8   :  { %2998 = vmatpush1.bf16.msra.mxu0 %v5309_v33 }
 0x1b9   :  { %2999 = vmatprep.subr.bf16.mxu0 %v5314_v34  ;;  %v4308_v36 = vpop.f32.mrb[16].mxu1 }
 0x1ba   :  { %v4309_v37 = vpop.f32.mrb[17].mxu1 }
 0x1bb   :  { %v4310_v38 = vadd.f32 %v4309_v37, %v4308_v36  ;;  %v4311_v39 = vpop.f32.mrb[18].mxu1 }
 0x1bc   :  { %3000 = vmatpush1.bf16.msra.mxu0 %v5312_v35  ;;  %v4312_v41 = vpop.f32.mrb[19].mxu1 }
 0x1bd   :  { %3001 = vmatprep.subr.bf16.mxu0 %v5317_v21  ;;  %v6699_v43 = vadd.f32 %v4310_v38, %v3145_v19  ;;  %v3381_v38 = vld [vmem:[%s6978_s3 + $0xe0] sm:$0xff] }
 0x1c0   :  { %3002 = vmatpush1.bf16.msra.mxu0 %v5315_v25 }
 0x1c1   :  { %3003 = vmatprep.subr.bf16.mxu0 %v5320_v40 }
 0x1c4   :  { %3004 = vmatpush1.bf16.msra.mxu0 %v5318_v44  ;;  %v3384_v44 = vld [vmem:[%s6978_s3 + $0xf8] sm:$0xff] }
 0x1c5   :  { %3005 = vmatprep.subr.bf16.mxu0 %v5323_v45 }
 0x1c8   :  { %3006 = vmatpush1.bf16.msra.mxu0 %v5321_v52  ;;  %v585_v52 = vsub.s32 0, %v6571_v42 }
 0x1c9   :  { %3007 = vmatprep.subr.bf16.mxu0 %v5326_v54  ;;  %v589_v54 = vsub.s32 1, %v6571_v42  ;;  %v3354_v42 = vld [vmem:[%s6978_s3 + $0x8] sm:$0xff] }
 0x1ca   :  { %v586_v56 = vrot.slane %v6586_v47, %v585_v52  ;;  %v3543_v52 = vld [vmem:[%s6978_s3 + $0x178] sm:$0xff] }
 0x1cb   :  { %v590_v57 = vrot.slane %v6586_v47, %v589_v54 }
 0x1cc   :  { %3008 = vmatpush1.bf16.msra.mxu0 %v5324_v59  ;;  %v2737_v58 = vadd.f32 %v6551_v29, %v586_v56  ;;  %v3355_v29 = vld [vmem:[%s6978_s3 + $0x10] sm:$0xff] }
 0x1cd   :  { %3009 = vmatprep.subr.bf16.mxu0 %v5329_v61  ;;  %v2739_v59 = vadd.f32 %v6557_v31, %v590_v57  ;;  %v3356_v31 = vld [vmem:[%s6978_s3 + $0x18] sm:$0xff] }
 0x1d0   :  { %3010 = vmatpush1.bf16.msra.mxu0 %v5327_v1 }
 0x1d1   :  { %3011 = vmatprep.subr.bf16.mxu0 %v5332_v2  ;;  %v3353_v2 = vld [vmem:[%s6978_s3] sm:$0xff] }
 0x1d2   :  { %v4687_v47 = vpack.c.bf16 %v3354_v42, %v3353_v2  ;;  %v3633_v42 = vld [vmem:[#allocation2 + $0x30] sm:$0xff] }
 0x1d4   :  { %3012 = vmatpush1.bf16.msra.mxu0 %v5330_v6  ;;  %v4690_v6 = vpack.c.bf16 %v3356_v31, %v3355_v29  ;;  %v3637_v31 = vld [vmem:[#allocation2 + $0x50] sm:$0xff] }
 0x1d5   :  { %3013 = vmatprep.subr.bf16.mxu0 %v5335_v8  ;;  %v3357_v8 = vld [vmem:[%s6978_s3 + $0x20] sm:$0xff] }
 0x1d6   :  { %v4693_v10 = vpack.c.bf16 %v3358_v9, %v3357_v8  ;;  %v3639_v9 = vld [vmem:[#allocation2 + $0x60] sm:$0xff] }
 0x1d8   :  { %3014 = vmatpush1.bf16.msra.mxu0 %v5333_v12  ;;  %v3360_v12 = vld [vmem:[%s6978_s3 + $0x38] sm:$0xff] }
 0x1d9   :  { %3015 = vmatprep.subr.bf16.mxu0 %v5338_v13  ;;  %v4330_v17 = vpop.f32.mrb[20].mxu1  ;;  %v4696_v13 = vpack.c.bf16 %v3360_v12, %v3359_v11  ;;  %v3641_v12 = vld [vmem:[#allocation2 + $0x70] sm:$0xff] }
 0x1da   :  { %v4331_v18 = vpop.f32.mrb[21].mxu1 }
 0x1db   :  { %v4332_v19 = vadd.f32 %v4331_v18, %v4330_v17  ;;  %v4333_v20 = vpop.f32.mrb[22].mxu1  ;;  %v3363_v17 = vld [vmem:[%s6978_s3 + $0x50] sm:$0xff]  ;;  %v3364_v18 = vld [vmem:[%s6978_s3 + $0x58] sm:$0xff] }
 0x1dc   :  { %3016 = vmatpush1.bf16.msra.mxu0 %v5336_v15  ;;  %v4334_v23 = vpop.f32.mrb[23].mxu1  ;;  %v3362_v15 = vld [vmem:[%s6978_s3 + $0x48] sm:$0xff] }
 0x1dd   :  { %3017 = vmatprep.subr.bf16.mxu0 %v5341_v16  ;;  %v3225_v24 = vadd.f32 %v4332_v19, %v6699_v43  ;;  %v3383_v43 = vld [vmem:[%s6978_s3 + $0xf0] sm:$0xff]  ;;  %v4699_v16 = vpack.c.bf16 %v3362_v15, %v3361_v14  ;;  %v3365_v19 = vld [vmem:[%s6978_s3 + $0x60] sm:$0xff]  ;;  %v3366_v20 = vld [vmem:[%s6978_s3 + $0x68] sm:$0xff] }
 0x1de   :  { %v4684_v46 = vpack.c.bf16 %v3384_v44, %v3383_v43  ;;  %v3367_v23 = vld [vmem:[%s6978_s3 + $0x70] sm:$0xff]  ;;  %v3539_v43 = vld [vmem:[%s6978_s3 + $0x158] sm:$0xff] }
 0x1e0   :  { %3018 = vmatpush1.bf16.msra.mxu0 %v5339_v7  ;;  %v4702_v7 = vpack.c.bf16 %v3364_v18, %v3363_v17 }
 0x1e1   :  { %3019 = vmatprep.subr.bf16.mxu0 %v5344_v22  ;;  %v4705_v22 = vpack.c.bf16 %v3366_v20, %v3365_v19  ;;  %v4223_v20 = vld [vmem:[%s6979_s4] ss:$0 sm:$0xff] }
 0x1e4   :  { %3020 = vmatpush1.bf16.msra.mxu0 %v5342_v27 }
 0x1e7   :  { %3022 = vmatmul.mubr.bf16.vlgmr.msra.gmra.mrb[0].mxu0 %v6541_v26  ;;  %v3382_v26 = vld [vmem:[%s6978_s3 + $0xe8] sm:$0xff] }
 0x1e8   :  { %v4681_v39 = vpack.c.bf16 %v3382_v26, %v3381_v38  ;;  %v3536_v26 = vld [vmem:[%s6978_s3 + $0x140] sm:$0xff] }
 0x1ea   :  { %4682 = vmatpush3.bf16.msra.mxu1 %v4681_v39  ;;  %v3537_v39 = vld [vmem:[%s6978_s3 + $0x148] sm:$0xff] }
 0x1eb   :  { %4683 = vmatprep.subr.bf16.mxu1 %v5397_v50 }
 0x1ee   :  { %4685 = vmatpush3.bf16.msra.mxu1 %v4684_v46  ;;  %v3541_v46 = vld [vmem:[%s6978_s3 + $0x168] sm:$0xff] }
 0x1ef   :  { %4686 = vmatprep.subr.bf16.mxu1 %v5397_v50 }
 0x1f9   :  { %v4352_v28 = vpop.f32.mrb[24].mxu1 }
 0x1fa   :  { %v4353_v30 = vpop.f32.mrb[25].mxu1 }
 0x1fb   :  { %v4354_v55 = vadd.f32 %v4353_v30, %v4352_v28  ;;  %v4355_v60 = vpop.f32.mrb[26].mxu1  ;;  %v3528_v28 = vld [vmem:[%s6978_s3 + $0x100] sm:$0xff]  ;;  %v3529_v30 = vld [vmem:[%s6978_s3 + $0x108] sm:$0xff] }
 0x1fc   :  { %v4356_v32 = vpop.f32.mrb[27].mxu1 }
 0x1fd   :  { %v3265_v33 = vadd.f32 %v4354_v55, %v3225_v24  ;;  %v3368_v24 = vld [vmem:[%s6978_s3 + $0x78] sm:$0xff]  ;;  %v4711_v55 = vpack.c.bf16 %v3529_v30, %v3528_v28  ;;  %v3530_v32 = vld [vmem:[%s6978_s3 + $0x110] sm:$0xff] }
 0x1fe   :  { %v4708_v27 = vpack.c.bf16 %v3368_v24, %v3367_v23  ;;  %v3721_v24 = vld [vmem:[#allocation4] sm:$0xff] }
 0x219   :  { %v4374_v34 = vpop.f32.mrb[28].mxu1 }
 0x21a   :  { %v4375_v35 = vpop.f32.mrb[29].mxu1 }
 0x21b   :  { %v4376_v21 = vadd.f32 %v4375_v35, %v4374_v34  ;;  %v4377_v36 = vpop.f32.mrb[30].mxu1  ;;  %v3532_v35 = vld [vmem:[%s6978_s3 + $0x120] sm:$0xff] }
 0x21c   :  { %v4378_v37 = vpop.f32.mrb[31].mxu1 }
 0x21d   :  { %v3305_v25 = vadd.f32 %v4376_v21, %v3265_v33  ;;  %v3531_v33 = vld [vmem:[%s6978_s3 + $0x118] sm:$0xff]  ;;  %v3533_v21 = vld [vmem:[%s6978_s3 + $0x128] sm:$0xff]  ;;  %v3534_v37 = vld [vmem:[%s6978_s3 + $0x130] sm:$0xff] }
 0x21e   :  { %v4714_v34 = vpack.c.bf16 %v3531_v33, %v3530_v32  ;;  %v4717_v36 = vpack.c.bf16 %v3533_v21, %v3532_v35  ;;  %v3724_v32 = vld [vmem:[#allocation4 + $0x18] sm:$0xff]  ;;  %v3726_v35 = vld [vmem:[#allocation4 + $0x28] sm:$0xff] }
 0x239   :  { %v4396_v40 = vpop.f32.mrb[32].mxu1 }
 0x23a   :  { %v4397_v41 = vpop.f32.mrb[33].mxu1 }
 0x23b   :  { %v4398_v45 = vadd.f32 %v4397_v41, %v4396_v40  ;;  %v4399_v48 = vpop.f32.mrb[34].mxu1  ;;  %v4723_v40 = vpack.c.bf16 %v3537_v39, %v3536_v26  ;;  %v3538_v41 = vld [vmem:[%s6978_s3 + $0x150] sm:$0xff]  ;;  %v3730_v26 = vld [vmem:[#allocation4 + $0x48] sm:$0xff] }
 0x23c   :  { %v4400_v49 = vpop.f32.mrb[35].mxu1  ;;  %v4726_v44 = vpack.c.bf16 %v3539_v43, %v3538_v41  ;;  %v3733_v43 = vld [vmem:[#allocation4 + $0x60] sm:$0xff] }
 0x23d   :  { %v6810_v51 = vadd.f32 %v4398_v45, %v3305_v25  ;;  %v3535_v25 = vld [vmem:[%s6978_s3 + $0x138] sm:$0xff]  ;;  %v3540_v45 = vld [vmem:[%s6978_s3 + $0x160] sm:$0xff]  ;;  %v3542_v49 = vld [vmem:[%s6978_s3 + $0x170] sm:$0xff] }
 0x23e   :  { %v4720_v38 = vpack.c.bf16 %v3535_v25, %v3534_v37  ;;  %v4729_v48 = vpack.c.bf16 %v3541_v46, %v3540_v45  ;;  %v4732_v54 = vpack.c.bf16 %v3543_v52, %v3542_v49  ;;  %v3728_v37 = vld [vmem:[#allocation4 + $0x38] sm:$0xff]  ;;  %v3735_v46 = vld [vmem:[#allocation4 + $0x70] sm:$0xff]  ;;  %v4224_v52 = vld [vmem:[%s6981_s6] ss:$0 sm:$0xff] }
 0x23f   :  { %v3352_v56 = vmax.f32 %v6810_v51, 0.0  ;;  %v3631_v51 = vld [vmem:[#allocation2 + $0x20] sm:$0xff] }
 0x241   :  { %v3545_v57 = vrot.slane %v3352_v56, 4 }
 0x2ba   :  { %v3023_v61 = vpop.f32.mrb[0].mxu0 }
 0x2bb   :  { %v4783_v62 = vadd.f32 %v3023_v61, %v2737_v58  ;;  %v3025_v63 = vpop.f32.mrb[1].mxu0  ;;  %v3627_v58 = vld [vmem:[#allocation2] sm:$0xff]  ;;  %v3629_v61 = vld [vmem:[#allocation2 + $0x10] sm:$0xff] }
 0x2bc   :  { %v4785_v0 = vadd.f32 %v3025_v63, %v2739_v59  ;;  %v3027_v1 = vpop.f32.mrb[2].mxu0  ;;  %v3628_v59 = vld [vmem:[#allocation2 + $0x8] sm:$0xff]  ;;  %v3630_v63 = vld [vmem:[#allocation2 + $0x18] sm:$0xff] }
 0x2bd   :  { %v3028_v3 = vpop.f32.mrb[3].mxu0  ;;  %v3350_v60 = vmax.f32 %v4783_v62, 0.0  ;;  %v4735_v62 = vpack.c.bf16 %v3628_v59, %v3627_v58  ;;  %v3632_v1 = vld [vmem:[#allocation2 + $0x28] sm:$0xff] }
 0x2be   :  { %v3351_v4 = vmax.f32 %v4785_v0, 0.0  ;;  %v4738_v0 = vpack.c.bf16 %v3630_v63, %v3629_v61  ;;  %v4741_v2 = vpack.c.bf16 %v3632_v1, %v3631_v51  ;;  %v3634_v3 = vld [vmem:[#allocation2 + $0x38] sm:$0xff] }
 0x2c0   :  { %v3386_v5 = vrot.slane %v3351_v4, 2  ;;  %v4744_v4 = vpack.c.bf16 %v3634_v3, %v3633_v42 }
 0x2c2   :  { %4520 = vmatmul.mubr.f32.vlgmr.msra.gmra.mrb[36].mxu1 %v3386_v5  ;;  %v3636_v5 = vld [vmem:[#allocation2 + $0x48] sm:$0xff] }
 0x2c3   :  { %4688 = vmatpush3.bf16.msra.mxu1 %v4687_v47  ;;  %4554 = vmatprep.mubr.msk.f32.mxu1 %vm5398_vm0, %v5399_v53  ;;  %v3635_v47 = vld [vmem:[#allocation2 + $0x40] sm:$0xff] }
 0x2c4   :  { %4689 = vmatprep.subr.bf16.mxu1 %v5397_v50  ;;  %v4747_v29 = vpack.c.bf16 %v3636_v5, %v3635_v47 }
 0x2c7   :  { %4691 = vmatpush3.bf16.msra.mxu1 %v4690_v6  ;;  %v3638_v6 = vld [vmem:[#allocation2 + $0x58] sm:$0xff] }
 0x2c8   :  { %4692 = vmatprep.subr.bf16.mxu1 %v5397_v50  ;;  %v4750_v8 = vpack.c.bf16 %v3638_v6, %v3637_v31 }
 0x2cb   :  { %4694 = vmatpush3.bf16.msra.mxu1 %v4693_v10  ;;  %v3640_v10 = vld [vmem:[#allocation2 + $0x68] sm:$0xff] }
 0x2cc   :  { %4695 = vmatprep.subr.bf16.mxu1 %v5397_v50  ;;  %v4753_v11 = vpack.c.bf16 %v3640_v10, %v3639_v9 }
 0x2cf   :  { %4697 = vmatpush3.bf16.msra.mxu1 %v4696_v13  ;;  %v3642_v13 = vld [vmem:[#allocation2 + $0x78] sm:$0xff] }
 0x2d0   :  { %4698 = vmatprep.subr.bf16.mxu1 %v5397_v50  ;;  %v4756_v14 = vpack.c.bf16 %v3642_v13, %v3641_v12 }
 0x2d3   :  { %4700 = vmatpush3.bf16.msra.mxu1 %v4699_v16 }
 0x2d4   :  { %4701 = vmatprep.subr.bf16.mxu1 %v5397_v50 }
 0x2d7   :  { %4703 = vmatpush3.bf16.msra.mxu1 %v4702_v7 }
 0x2d8   :  { %4704 = vmatprep.subr.bf16.mxu1 %v5397_v50 }
 0x2db   :  { %4706 = vmatpush3.bf16.msra.mxu1 %v4705_v22 }
 0x2dc   :  { %4707 = vmatprep.subr.bf16.mxu1 %v5397_v50 }
 0x2df   :  { %4709 = vmatpush3.bf16.msra.mxu1 %v4708_v27  ;;  %v3722_v27 = vld [vmem:[#allocation4 + $0x8] sm:$0xff] }
 0x2e0   :  { %4710 = vmatprep.subr.bf16.mxu1 %v5397_v50  ;;  %v4759_v30 = vpack.c.bf16 %v3722_v27, %v3721_v24 }
 0x2e2   :  { %4555 = vmatmul.mubr.f32.vlgmr.msra.gmra.mrb[38].mxu1 %v3350_v60  ;;  %v3723_v60 = vld [vmem:[#allocation4 + $0x10] sm:$0xff] }
 0x2e3   :  { %4712 = vmatpush3.bf16.msra.mxu1 %v4711_v55  ;;  %4589 = vmatprep.mubr.msk.f32.mxu1 %vm5398_vm0, %v5399_v53  ;;  %v4762_v33 = vpack.c.bf16 %v3724_v32, %v3723_v60 }
 0x2e4   :  { %4713 = vmatprep.subr.bf16.mxu1 %v5397_v50 }
 0x2e7   :  { %4715 = vmatpush3.bf16.msra.mxu1 %v4714_v34  ;;  %v3725_v34 = vld [vmem:[#allocation4 + $0x20] sm:$0xff] }
 0x2e8   :  { %4716 = vmatprep.subr.bf16.mxu1 %v5397_v50  ;;  %v4765_v21 = vpack.c.bf16 %v3726_v35, %v3725_v34 }
 0x2eb   :  { %4718 = vmatpush3.bf16.msra.mxu1 %v4717_v36  ;;  %v3727_v36 = vld [vmem:[#allocation4 + $0x30] sm:$0xff] }
 0x2ec   :  { %4719 = vmatprep.subr.bf16.mxu1 %v5397_v50  ;;  %v4768_v25 = vpack.c.bf16 %v3728_v37, %v3727_v36 }
 0x2ef   :  { %4721 = vmatpush3.bf16.msra.mxu1 %v4720_v38  ;;  %v3729_v38 = vld [vmem:[#allocation4 + $0x40] sm:$0xff] }
 0x2f0   :  { %4722 = vmatprep.subr.bf16.mxu1 %v5397_v50  ;;  %v4771_v39 = vpack.c.bf16 %v3730_v26, %v3729_v38 }
 0x2f3   :  { %4724 = vmatpush3.bf16.msra.mxu1 %v4723_v40  ;;  %v3732_v40 = vld [vmem:[#allocation4 + $0x58] sm:$0xff] }
 0x2f4   :  { %4725 = vmatprep.subr.bf16.mxu1 %v5397_v50 }
 0x2f7   :  { %4727 = vmatpush3.bf16.msra.mxu1 %v4726_v44  ;;  %v3734_v44 = vld [vmem:[#allocation4 + $0x68] sm:$0xff] }
 0x2f8   :  { %4728 = vmatprep.subr.bf16.mxu1 %v5397_v50  ;;  %v4777_v45 = vpack.c.bf16 %v3734_v44, %v3733_v43 }
 0x2fb   :  { %4730 = vmatpush3.bf16.msra.mxu1 %v4729_v48  ;;  %v3736_v48 = vld [vmem:[#allocation4 + $0x78] sm:$0xff] }
 0x2fc   :  { %4731 = vmatprep.subr.bf16.mxu1 %v5397_v50  ;;  %v4780_v49 = vpack.c.bf16 %v3736_v48, %v3735_v46 }
 0x2ff   :  { %4733 = vmatpush3.bf16.msra.mxu1 %v4732_v54 }
 0x300   :  { %4734 = vmatprep.subr.bf16.mxu1 %v5397_v50 }
 0x302   :  { %4590 = vmatmul.mubr.f32.vlgmr.msra.gmra.mrb[40].mxu1 %v3545_v57 }
 0x303   :  { %4624 = vmatprep.mubr.msk.f32.mxu1 %vm5398_vm0, %v5399_v53  ;;  %4736 = vmatpush3.bf16.msra.mxu1 %v4735_v62 }
 0x304   :  { %4737 = vmatprep.subr.bf16.mxu1 %v5397_v50 }
 0x307   :  { %4739 = vmatpush3.bf16.msra.mxu1 %v4738_v0 }
 0x308   :  { %4740 = vmatprep.subr.bf16.mxu1 %v5397_v50 }
 0x30b   :  { %4742 = vmatpush3.bf16.msra.mxu1 %v4741_v2 }
 0x30c   :  { %4743 = vmatprep.subr.bf16.mxu1 %v5397_v50 }
 0x30f   :  { %4745 = vmatpush3.bf16.msra.mxu1 %v4744_v4 }
 0x310   :  { %4746 = vmatprep.subr.bf16.mxu1 %v5397_v50 }
 0x313   :  { %4748 = vmatpush3.bf16.msra.mxu1 %v4747_v29 }
 0x314   :  { %4749 = vmatprep.subr.bf16.mxu1 %v5397_v50 }
 0x317   :  { %4751 = vmatpush3.bf16.msra.mxu1 %v4750_v8 }
 0x318   :  { %4752 = vmatprep.subr.bf16.mxu1 %v5397_v50 }
 0x31b   :  { %4754 = vmatpush3.bf16.msra.mxu1 %v4753_v11 }
 0x31c   :  { %4755 = vmatprep.subr.bf16.mxu1 %v5397_v50 }
 0x31f   :  { %4757 = vmatpush3.bf16.msra.mxu1 %v4756_v14 }
 0x320   :  { %4758 = vmatprep.subr.bf16.mxu1 %v5397_v50 }
 0x395   :  { %v3454_v15 = vpop.f32.mrb[36].mxu1 }
 0x396   :  { %v4521_v16 = vpop.f32.mrb[37].mxu1 }
 0x3b5   :  { %v3524_v17 = vpop.f32.mrb[38].mxu1 }
 0x3b6   :  { %v3525_v18 = vadd.f32 %v3524_v17, %v3454_v15  ;;  %v4556_v7 = vpop.f32.mrb[39].mxu1 }
 0x3d5   :  { %v3613_v19 = vpop.f32.mrb[40].mxu1 }
 0x3d6   :  { %v3617_v22 = vadd.f32 %v3613_v19, %v3525_v18  ;;  %v4591_v23 = vpop.f32.mrb[41].mxu1 }
 0x3d8   :  { %v3625_v28 = vadd.f32 %v4223_v20, %v3617_v22 }
 0x3da   :  { %v3626_v55 = vmax.f32 %v3625_v28, 0.0 }
 0x3dc   :  { %3814 = vst [vmem:[%s6984_s9] sm:$0x3] %v3626_v55  ;;  %4625 = vmatmul.mubr.f32.vlgmr.msra.gmra.mrb[42].mxu1 %v3626_v55 }
 0x3dd   :  { %4760 = vmatpush3.bf16.msra.mxu1 %v4759_v30  ;;  %4659 = vmatprep.mubr.msk.f32.mxu1 %vm5398_vm0, %v5399_v53  ;;  %v3731_v53 = vld [vmem:[#allocation4 + $0x50] sm:$0xff] }
 0x3de   :  { %4761 = vmatprep.subr.bf16.mxu1 %v5397_v50  ;;  %v4774_v41 = vpack.c.bf16 %v3732_v40, %v3731_v53 }
 0x3e1   :  { %4763 = vmatpush3.bf16.msra.mxu1 %v4762_v33 }
 0x3e2   :  { %4764 = vmatprep.subr.bf16.mxu1 %v5397_v50 }
 0x3e5   :  { %4766 = vmatpush3.bf16.msra.mxu1 %v4765_v21 }
 0x3e6   :  { %4767 = vmatprep.subr.bf16.mxu1 %v5397_v50 }
 0x3e9   :  { %4769 = vmatpush3.bf16.msra.mxu1 %v4768_v25 }
 0x3ea   :  { %4770 = vmatprep.subr.bf16.mxu1 %v5397_v50 }
 0x3ed   :  { %4772 = vmatpush3.bf16.msra.mxu1 %v4771_v39 }
 0x3ee   :  { %4773 = vmatprep.subr.bf16.mxu1 %v5397_v50 }
 0x3f1   :  { %4775 = vmatpush3.bf16.msra.mxu1 %v4774_v41 }
 0x3f2   :  { %4776 = vmatprep.subr.bf16.mxu1 %v5397_v50 }
 0x3f5   :  { %4778 = vmatpush3.bf16.msra.mxu1 %v4777_v45 }
 0x3f6   :  { %4779 = vmatprep.subr.bf16.mxu1 %v5397_v50  ;;  %v4225_v50 = vld [vmem:[%s6983_s8] ss:$0 sm:$0xff] }
 0x3f9   :  { %4781 = vmatpush3.bf16.msra.mxu1 %v4780_v49 }
 0x4af   :  { %v3716_v54 = vpop.f32.mrb[42].mxu1 }
 0x4b0   :  { %v3717_v56 = vadd.f32 %v4224_v52, %v3716_v54  ;;  %v4626_v57 = vpop.f32.mrb[43].mxu1 }
 0x4b2   :  { %v3720_v58 = vmax.f32 %v3717_v56, 0.0 }
 0x4b4   :  { %3815 = vst [vmem:[%s6984_s9 + $0x2] sm:$0x3] %v3720_v58  ;;  %4660 = vmatmul.mubr.f32.vlgmr.msra.gmra.mrb[44].mxu1 %v3720_v58 }
 0x587   :  { %v3810_v59 = vpop.f32.mrb[44].mxu1 }
 0x588   :  { %v3811_v61 = vadd.f32 %v4225_v50, %v3810_v59  ;;  %v4661_v62 = vpop.f32.mrb[45].mxu1 }
 0x58a   :  { %3816 = vst [vmem:[%s6984_s9 + $0x4] sm:$0x3] %v3811_v61 }
 0x58b   :  { %3821 = vsyncpa [#allocation3], 1 }
 0x58c   :  { %3822 = vsyncpa [#allocation5], 1 }

</bundles_post_ra>
